<compile_context>
chip_gen: v7x
topology: tpu7x:2x2x1
jax: 0.10.0
libtpu: 0.0.40
codegen_flags: <defaults>
</compile_context>

<pallas_src>
import functools
import math

import jax
import jax.numpy as jnp
from jax import lax
from jax.experimental import pallas as pl
from jax.experimental.pallas import tpu as pltpu


# ----------------------------------------------------------------------------
# Fused DownConv kernel (conv3x3 + ReLU + conv3x3 + ReLU + optional maxpool2x2)
# ----------------------------------------------------------------------------

def _make_downconv_kernel(H, W, Cout, pooling):
    HW = H * W

    def kernel(x_ref, w1_ref, b1_ref, w2_ref, b2_ref, *refs):
        if pooling:
            sel_ref, bp_ref, pool_ref = refs
        else:
            (bp_ref,) = refs

        # Flat spatial index (lane axis) and its column coordinate, hoisted
        # once and reused for the boundary masks of both convolutions.
        jj = lax.broadcasted_iota(jnp.int32, (1, HW), 1)
        ww = jj % W

        def conv3x3_relu(x2d, w_ref, b_ref):
            """x2d: (C, H*W) bf16  ->  relu(conv3x3(x) + b): (Cout, H*W) f32."""
            acc = jnp.zeros((Cout, HW), jnp.float32)
            for k in range(9):
                dy, dx = k // 3 - 1, k % 3 - 1
                s = dy * W + dx
                # tap[c, h*W + w] = x[c, h+dy, w+dx]   (zero outside the image)
                t = x2d if s == 0 else jnp.roll(x2d, -s, axis=1)
                conds = []
                if dy == -1:
                    conds.append(jj >= W)               # h + dy >= 0
                elif dy == 1:
                    conds.append(jj < (H - 1) * W)      # h + dy <= H-1
                if dx == -1:
                    conds.append(ww >= 1)               # w + dx >= 0
                elif dx == 1:
                    conds.append(ww <= W - 2)           # w + dx <= W-1
                if conds:
                    valid = functools.reduce(jnp.logical_and, conds)
                    t = jnp.where(valid, t, jnp.zeros_like(t))
                # Accumulating (Cout, C) @ (C, H*W) matmul, f32 accumulation.
                acc = acc + jnp.dot(w_ref[k], t,
                                    preferred_element_type=jnp.float32)
            return jnp.maximum(acc + b_ref[...], 0.0)

        # conv1 + ReLU, conv2 + ReLU -- intermediate never leaves vregs/VMEM.
        a1 = conv3x3_relu(x_ref[0].astype(jnp.bfloat16), w1_ref, b1_ref)
        a2 = conv3x3_relu(a1.astype(jnp.bfloat16), w2_ref, b2_ref)

        # before_pool: lane-dense (Cout, H*W) store.
        bp_ref[0] = a2

        if pooling:
            # 2x2/stride-2 maxpool from the value still in vregs:
            #   m[:, j] = max(a2[:, j], a2[:, j+1])
            #   p[:, j] = max(m[:, j],  m[:, j+W])
            # then gather the (even h, even w) columns with a constant 0/1
            # selection matrix on the (idle) MXU -- no strided ref reads and
            # no read-after-write on the just-written output block.
            m = jnp.maximum(a2, jnp.roll(a2, -1, axis=1))
            p = jnp.maximum(m, jnp.roll(m, -W, axis=1))
            pool_ref[0] = jnp.dot(p, sel_ref[...],
                                  preferred_element_type=jnp.float32)

    return kernel


def _pool_selection_matrix(H, W):
    """(H*W, (H//2)*(W//2)) f32 0/1 matrix selecting the top-left flat index of
    every 2x2 pooling window."""
    H2, W2 = H // 2, W // 2
    q = jnp.arange(H2 * W2, dtype=jnp.int32)
    j0 = (q // W2) * (2 * W) + (q % W2) * 2
    j = jnp.arange(H * W, dtype=jnp.int32)
    return (j[:, None] == j0[None, :]).astype(jnp.float32)


def downconv(x_flat, w1, b1, w2, b2, *, H, W, pooling=True):
    """x_flat: (N, Cin, H*W) f32 (flattened NCHW).
    Returns (before_pool (N, Cout, H*W), pooled (N, Cout, (H//2)*(W//2)) or None)."""
    N, Cin, HW = x_flat.shape
    assert HW == H * W and H % 2 == 0 and W % 2 == 0
    Cout = w1.shape[1]
    Q = (H // 2) * (W // 2)

    kernel = _make_downconv_kernel(H, W, Cout, pooling)

    in_specs = [
        pl.BlockSpec((1, Cin, HW), lambda n: (n, 0, 0)),      # x   (per image)
        pl.BlockSpec((9, Cout, Cin), lambda n: (0, 0, 0)),    # w1  (resident)
        pl.BlockSpec((Cout, 1), lambda n: (0, 0)),            # b1  (resident)
        pl.BlockSpec((9, Cout, Cout), lambda n: (0, 0, 0)),   # w2  (resident)
        pl.BlockSpec((Cout, 1), lambda n: (0, 0)),            # b2  (resident)
    ]
    args = [x_flat, w1, b1, w2, b2]

    bp_shape = jax.ShapeDtypeStruct((N, Cout, HW), jnp.float32)
    bp_spec = pl.BlockSpec((1, Cout, HW), lambda n: (n, 0, 0))

    if pooling:
        in_specs.append(pl.BlockSpec((HW, Q), lambda n: (0, 0)))   # sel (resident)
        args.append(_pool_selection_matrix(H, W))
        out_shape = (bp_shape, jax.ShapeDtypeStruct((N, Cout, Q), jnp.float32))
        out_specs = (bp_spec, pl.BlockSpec((1, Cout, Q), lambda n: (n, 0, 0)))
    else:
        out_shape = bp_shape
        out_specs = bp_spec

    outs = pl.pallas_call(
        kernel,
        out_shape=out_shape,
        grid=(N,),
        in_specs=in_specs,
        out_specs=out_specs,
        compiler_params=pltpu.CompilerParams(
            dimension_semantics=("parallel",),
            # Tiny here; sized so larger H-tiles still fit v7x's 64 MiB
            # physical VMEM (v5e/v6e have 128 MiB physical).
            vmem_limit_bytes=48 * 1024 * 1024,
        ),
    )(*args)

    if pooling:
        return outs[0], outs[1]
    return outs, None


# ----------------------------------------------------------------------------
# Parameters + module-level forward (NCHW interface, like the PyTorch module)
# ----------------------------------------------------------------------------

def _pack_conv_weight(w_oihw):
    # torch OIHW (O, I, 3, 3) -> (9, O, I) bf16; tap index k = ky*3 + kx.
    O, I = w_oihw.shape[0], w_oihw.shape[1]
    return jnp.transpose(w_oihw, (2, 3, 0, 1)).reshape(9, O, I).astype(jnp.bfloat16)


def init_downconv_params(key, in_channels, out_channels):
    # Mirrors torch Conv2d default init: uniform(-1/sqrt(fan_in), 1/sqrt(fan_in)).
    k1, k2, k3, k4 = jax.random.split(key, 4)

    def conv_w(k, cin, cout):
        bound = 1.0 / math.sqrt(cin * 9)
        return jax.random.uniform(k, (cout, cin, 3, 3), jnp.float32, -bound, bound)

    w1 = conv_w(k1, in_channels, out_channels)
    w2 = conv_w(k2, out_channels, out_channels)
    b1 = jax.random.uniform(k3, (out_channels,), jnp.float32,
                            -1.0 / math.sqrt(in_channels * 9),
                            1.0 / math.sqrt(in_channels * 9))
    b2 = jax.random.uniform(k4, (out_channels,), jnp.float32,
                            -1.0 / math.sqrt(out_channels * 9),
                            1.0 / math.sqrt(out_channels * 9))
    return {
        "w1": _pack_conv_weight(w1), "b1": b1.reshape(out_channels, 1),
        "w2": _pack_conv_weight(w2), "b2": b2.reshape(out_channels, 1),
        "w1_oihw": w1, "w2_oihw": w2,   # f32 copies kept only for the reference
    }


def downconv_forward(params, x_nchw, pooling=True):
    N, Cin, H, W = x_nchw.shape
    Cout = params["w1"].shape[1]
    # Flattened NCHW == the kernel's lane-dense (C, H*W) layout: free reshapes.
    x_flat = x_nchw.astype(jnp.float32).reshape(N, Cin, H * W)
    before_flat, pooled_flat = downconv(x_flat, params["w1"], params["b1"],
                                        params["w2"], params["b2"],
                                        H=H, W=W, pooling=pooling)
    before = before_flat.reshape(N, Cout, H, W)
    if pooling:
        pooled = pooled_flat.reshape(N, Cout, H // 2, W // 2)
    else:
        pooled = before   # module returns (x, before_pool) with x == before_pool
    return pooled, before


# ----------------------------------------------------------------------------
# Pure-JAX reference (same math as the PyTorch module)
# ----------------------------------------------------------------------------

def ref_downconv(x_nchw, w1_oihw, b1, w2_oihw, b2, pooling=True):
    dn = ("NCHW", "OIHW", "NCHW")
    y = lax.conv_general_dilated(x_nchw, w1_oihw, (1, 1), "SAME",
                                 dimension_numbers=dn)
    y = jax.nn.relu(y + b1.reshape(1, -1, 1, 1))
    y = lax.conv_general_dilated(y, w2_oihw, (1, 1), "SAME",
                                 dimension_numbers=dn)
    y = jax.nn.relu(y + b2.reshape(1, -1, 1, 1))
    before = y
    if pooling:
        y = lax.reduce_window(y, -jnp.inf, lax.max,
                              (1, 1, 2, 2), (1, 1, 2, 2), "VALID")
    return y, before


# ----------------------------------------------------------------------------
# Main
# ----------------------------------------------------------------------------

if __name__ == "__main__":
    key = jax.random.PRNGKey(0)
    kp, kx = jax.random.split(key)

    N, Cin, H, W = 2, 4, 16, 16
    Cout = 16

    params = init_downconv_params(kp, Cin, Cout)
    x = jax.random.normal(kx, (N, Cin, H, W), dtype=jnp.float32)

    # pooling=True (default DownConv)
    fwd = jax.jit(functools.partial(downconv_forward, pooling=True))
    pooled, before = fwd(params, x)
    jax.block_until_ready((pooled, before))

    assert pooled.shape == (N, Cout, H // 2, W // 2), pooled.shape
    assert before.shape == (N, Cout, H, W), before.shape
    assert bool(jnp.all(jnp.isfinite(pooled))) and bool(jnp.all(jnp.isfinite(before)))

    ref_pooled, ref_before = ref_downconv(x, params["w1_oihw"], params["b1"],
                                          params["w2_oihw"], params["b2"],
                                          pooling=True)
    # bf16 MXU inputs with f32 accumulation -> 2e-2 tolerance vs f32 reference.
    assert bool(jnp.allclose(before, ref_before, atol=2e-2, rtol=2e-2))
    assert bool(jnp.allclose(pooled, ref_pooled, atol=2e-2, rtol=2e-2))

    # pooling=False path (module returns (x, before_pool) with x == before_pool)
    fwd_np = jax.jit(functools.partial(downconv_forward, pooling=False))
    x_np, bp_np = fwd_np(params, x)
    jax.block_until_ready((x_np, bp_np))
    assert x_np.shape == (N, Cout, H, W)
    assert bool(jnp.allclose(x_np, bp_np))
    assert bool(jnp.allclose(bp_np, ref_before, atol=2e-2, rtol=2e-2))

    print("KERNEL_OK")
</pallas_src>

<mosaic_0001>
module attributes {stable_mosaic.version = 11 : i64} {
  func.func @kernel(%arg0: i32, %arg1: memref<1x4x256xf32, #tpu.memory_space<vmem>>, %arg2: memref<9x16x4xbf16, #tpu.memory_space<vmem>>, %arg3: memref<16x1xf32, #tpu.memory_space<vmem>>, %arg4: memref<9x16x16xbf16, #tpu.memory_space<vmem>>, %arg5: memref<16x1xf32, #tpu.memory_space<vmem>>, %arg6: memref<256x64xf32, #tpu.memory_space<vmem>>, %arg7: memref<1x16x256xf32, #tpu.memory_space<vmem>>, %arg8: memref<1x16x64xf32, #tpu.memory_space<vmem>>) attributes {dimension_semantics = [#tpu.dimension_semantics<parallel>], iteration_bounds = array<i64: 2>, scalar_prefetch = 0 : i64, scratch_operands = 0 : i64, tpu.core_type = #tpu.core_type<tc>, window_params = [{transform_indices = @transform_0, window_bounds = array<i64: 1, 4, 256>}, {pipeline_mode = #tpu.pipeline_mode<synchronous>, transform_indices = @transform_1, window_bounds = array<i64: 9, 16, 4>}, {pipeline_mode = #tpu.pipeline_mode<synchronous>, transform_indices = @transform_2, window_bounds = array<i64: 16, 1>}, {pipeline_mode = #tpu.pipeline_mode<synchronous>, transform_indices = @transform_3, window_bounds = array<i64: 9, 16, 16>}, {pipeline_mode = #tpu.pipeline_mode<synchronous>, transform_indices = @transform_4, window_bounds = array<i64: 16, 1>}, {pipeline_mode = #tpu.pipeline_mode<synchronous>, transform_indices = @transform_5, window_bounds = array<i64: 256, 64>}, {transform_indices = @transform_6, window_bounds = array<i64: 1, 16, 256>}, {transform_indices = @transform_7, window_bounds = array<i64: 1, 16, 64>}]} {
    %0 = tpu.iota {dimensions = array<i32: 1>} : vector<1x256xi32>
    %c16_i32 = arith.constant 16 : i32
    %c0_i32 = arith.constant 0 : i32
    %1 = arith.cmpi eq, %c16_i32, %c0_i32 : i32
    %c1_i32 = arith.constant 1 : i32
    %2 = arith.select %1, %c1_i32, %c16_i32 : i32
    %3 = vector.broadcast %2 : i32 to vector<1x256xi32>
    %4 = arith.remsi %0, %3 : vector<1x256xi32>
    %c0_i32_0 = arith.constant 0 : i32
    %5 = vector.broadcast %c0_i32_0 : i32 to vector<1x256xi32>
    %6 = arith.cmpi ne, %4, %5 : vector<1x256xi32>
    %c0_i32_1 = arith.constant 0 : i32
    %7 = vector.broadcast %c0_i32_1 : i32 to vector<1x256xi32>
    %8 = arith.cmpi slt, %4, %7 : vector<1x256xi32>
    %c0_i32_2 = arith.constant 0 : i32
    %9 = arith.cmpi slt, %2, %c0_i32_2 : i32
    %10 = vector.broadcast %9 : i1 to vector<1x256xi1>
    %11 = vector.broadcast %10 : vector<1x256xi1> to vector<1x256xi1>
    %12 = arith.xori %8, %11 : vector<1x256xi1>
    %13 = arith.andi %12, %6 : vector<1x256xi1>
    %14 = vector.broadcast %2 : i32 to vector<1x256xi32>
    %15 = arith.addi %4, %14 : vector<1x256xi32>
    %16 = arith.select %13, %15, %4 : vector<1x256xi1>, vector<1x256xi32>
    %c0 = arith.constant 0 : index
    %c0_3 = arith.constant 0 : index
    %c0_4 = arith.constant 0 : index
    %17 = vector.load %arg1[%c0, %c0_3, %c0_4] : memref<1x4x256xf32, #tpu.memory_space<vmem>>, vector<1x4x256xf32>
    %18 = vector.shape_cast %17 : vector<1x4x256xf32> to vector<4x256xf32>
    %19 = arith.truncf %18 : vector<4x256xf32> to vector<4x256xbf16>
    %cst = arith.constant 0.000000e+00 : f32
    %20 = vector.broadcast %cst : f32 to vector<16x256xf32>
    %21 = vector.extract_strided_slice %19 {offsets = [0, 239], sizes = [4, 17], strides = [1, 1]} : vector<4x256xbf16> to vector<4x17xbf16>
    %22 = vector.extract_strided_slice %19 {offsets = [0, 0], sizes = [4, 239], strides = [1, 1]} : vector<4x256xbf16> to vector<4x239xbf16>
    %23 = tpu.concatenate %21, %22 in 1 : vector<4x17xbf16>, vector<4x239xbf16> -> vector<4x256xbf16>
    %c16_i32_5 = arith.constant 16 : i32
    %24 = vector.broadcast %c16_i32_5 : i32 to vector<1x256xi32>
    %25 = arith.cmpi sge, %0, %24 : vector<1x256xi32>
    %c1_i32_6 = arith.constant 1 : i32
    %26 = vector.broadcast %c1_i32_6 : i32 to vector<1x256xi32>
    %27 = arith.cmpi sge, %16, %26 : vector<1x256xi32>
    %28 = arith.andi %25, %27 : vector<1x256xi1>
    %cst_7 = arith.constant 0.000000e+00 : bf16
    %29 = vector.broadcast %cst_7 : bf16 to vector<4x256xbf16>
    %30 = vector.shape_cast %28 : vector<1x256xi1> to vector<1x256xi1>
    %31 = vector.broadcast %30 : vector<1x256xi1> to vector<4x256xi1>
    %32 = arith.select %31, %23, %29 : vector<4x256xi1>, vector<4x256xbf16>
    %c0_8 = arith.constant 0 : index
    %c0_9 = arith.constant 0 : index
    %c0_10 = arith.constant 0 : index
    %33 = vector.load %arg2[%c0_8, %c0_9, %c0_10] : memref<9x16x4xbf16, #tpu.memory_space<vmem>>, vector<1x16x4xbf16>
    %34 = vector.shape_cast %33 : vector<1x16x4xbf16> to vector<16x4xbf16>
    %cst_11 = arith.constant dense<0.000000e+00> : vector<16x256xf32>
    %35 = tpu.matmul %34, %32, %cst_11 {dimension_numbers = #tpu.dot_dimension_numbers<[1], [0], [0], [1], [0, 0, 1, 1], [], []>} : vector<16x4xbf16>, vector<4x256xbf16>, vector<16x256xf32> -> vector<16x256xf32>
    %36 = arith.addf %20, %35 : vector<16x256xf32>
    %37 = vector.extract_strided_slice %19 {offsets = [0, 240], sizes = [4, 16], strides = [1, 1]} : vector<4x256xbf16> to vector<4x16xbf16>
    %38 = vector.extract_strided_slice %19 {offsets = [0, 0], sizes = [4, 240], strides = [1, 1]} : vector<4x256xbf16> to vector<4x240xbf16>
    %39 = tpu.concatenate %37, %38 in 1 : vector<4x16xbf16>, vector<4x240xbf16> -> vector<4x256xbf16>
    %c16_i32_12 = arith.constant 16 : i32
    %40 = vector.broadcast %c16_i32_12 : i32 to vector<1x256xi32>
    %41 = arith.cmpi sge, %0, %40 : vector<1x256xi32>
    %cst_13 = arith.constant 0.000000e+00 : bf16
    %42 = vector.broadcast %cst_13 : bf16 to vector<4x256xbf16>
    %43 = vector.shape_cast %41 : vector<1x256xi1> to vector<1x256xi1>
    %44 = vector.broadcast %43 : vector<1x256xi1> to vector<4x256xi1>
    %45 = arith.select %44, %39, %42 : vector<4x256xi1>, vector<4x256xbf16>
    %c1 = arith.constant 1 : index
    %c0_14 = arith.constant 0 : index
    %c0_15 = arith.constant 0 : index
    %46 = vector.load %arg2[%c1, %c0_14, %c0_15] : memref<9x16x4xbf16, #tpu.memory_space<vmem>>, vector<1x16x4xbf16>
    %47 = vector.shape_cast %46 : vector<1x16x4xbf16> to vector<16x4xbf16>
    %cst_16 = arith.constant dense<0.000000e+00> : vector<16x256xf32>
    %48 = tpu.matmul %47, %45, %cst_16 {dimension_numbers = #tpu.dot_dimension_numbers<[1], [0], [0], [1], [0, 0, 1, 1], [], []>} : vector<16x4xbf16>, vector<4x256xbf16>, vector<16x256xf32> -> vector<16x256xf32>
    %49 = arith.addf %36, %48 : vector<16x256xf32>
    %50 = vector.extract_strided_slice %19 {offsets = [0, 241], sizes = [4, 15], strides = [1, 1]} : vector<4x256xbf16> to vector<4x15xbf16>
    %51 = vector.extract_strided_slice %19 {offsets = [0, 0], sizes = [4, 241], strides = [1, 1]} : vector<4x256xbf16> to vector<4x241xbf16>
    %52 = tpu.concatenate %50, %51 in 1 : vector<4x15xbf16>, vector<4x241xbf16> -> vector<4x256xbf16>
    %c16_i32_17 = arith.constant 16 : i32
    %53 = vector.broadcast %c16_i32_17 : i32 to vector<1x256xi32>
    %54 = arith.cmpi sge, %0, %53 : vector<1x256xi32>
    %c14_i32 = arith.constant 14 : i32
    %55 = vector.broadcast %c14_i32 : i32 to vector<1x256xi32>
    %56 = arith.cmpi sle, %16, %55 : vector<1x256xi32>
    %57 = arith.andi %54, %56 : vector<1x256xi1>
    %cst_18 = arith.constant 0.000000e+00 : bf16
    %58 = vector.broadcast %cst_18 : bf16 to vector<4x256xbf16>
    %59 = vector.shape_cast %57 : vector<1x256xi1> to vector<1x256xi1>
    %60 = vector.broadcast %59 : vector<1x256xi1> to vector<4x256xi1>
    %61 = arith.select %60, %52, %58 : vector<4x256xi1>, vector<4x256xbf16>
    %c2 = arith.constant 2 : index
    %c0_19 = arith.constant 0 : index
    %c0_20 = arith.constant 0 : index
    %62 = vector.load %arg2[%c2, %c0_19, %c0_20] : memref<9x16x4xbf16, #tpu.memory_space<vmem>>, vector<1x16x4xbf16>
    %63 = vector.shape_cast %62 : vector<1x16x4xbf16> to vector<16x4xbf16>
    %cst_21 = arith.constant dense<0.000000e+00> : vector<16x256xf32>
    %64 = tpu.matmul %63, %61, %cst_21 {dimension_numbers = #tpu.dot_dimension_numbers<[1], [0], [0], [1], [0, 0, 1, 1], [], []>} : vector<16x4xbf16>, vector<4x256xbf16>, vector<16x256xf32> -> vector<16x256xf32>
    %65 = arith.addf %49, %64 : vector<16x256xf32>
    %66 = vector.extract_strided_slice %19 {offsets = [0, 255], sizes = [4, 1], strides = [1, 1]} : vector<4x256xbf16> to vector<4x1xbf16>
    %67 = vector.extract_strided_slice %19 {offsets = [0, 0], sizes = [4, 255], strides = [1, 1]} : vector<4x256xbf16> to vector<4x255xbf16>
    %68 = tpu.concatenate %66, %67 in 1 : vector<4x1xbf16>, vector<4x255xbf16> -> vector<4x256xbf16>
    %c1_i32_22 = arith.constant 1 : i32
    %69 = vector.broadcast %c1_i32_22 : i32 to vector<1x256xi32>
    %70 = arith.cmpi sge, %16, %69 : vector<1x256xi32>
    %cst_23 = arith.constant 0.000000e+00 : bf16
    %71 = vector.broadcast %cst_23 : bf16 to vector<4x256xbf16>
    %72 = vector.shape_cast %70 : vector<1x256xi1> to vector<1x256xi1>
    %73 = vector.broadcast %72 : vector<1x256xi1> to vector<4x256xi1>
    %74 = arith.select %73, %68, %71 : vector<4x256xi1>, vector<4x256xbf16>
    %c3 = arith.constant 3 : index
    %c0_24 = arith.constant 0 : index
    %c0_25 = arith.constant 0 : index
    %75 = vector.load %arg2[%c3, %c0_24, %c0_25] : memref<9x16x4xbf16, #tpu.memory_space<vmem>>, vector<1x16x4xbf16>
    %76 = vector.shape_cast %75 : vector<1x16x4xbf16> to vector<16x4xbf16>
    %cst_26 = arith.constant dense<0.000000e+00> : vector<16x256xf32>
    %77 = tpu.matmul %76, %74, %cst_26 {dimension_numbers = #tpu.dot_dimension_numbers<[1], [0], [0], [1], [0, 0, 1, 1], [], []>} : vector<16x4xbf16>, vector<4x256xbf16>, vector<16x256xf32> -> vector<16x256xf32>
    %78 = arith.addf %65, %77 : vector<16x256xf32>
    %c4 = arith.constant 4 : index
    %c0_27 = arith.constant 0 : index
    %c0_28 = arith.constant 0 : index
    %79 = vector.load %arg2[%c4, %c0_27, %c0_28] : memref<9x16x4xbf16, #tpu.memory_space<vmem>>, vector<1x16x4xbf16>
    %80 = vector.shape_cast %79 : vector<1x16x4xbf16> to vector<16x4xbf16>
    %cst_29 = arith.constant dense<0.000000e+00> : vector<16x256xf32>
    %81 = tpu.matmul %80, %19, %cst_29 {dimension_numbers = #tpu.dot_dimension_numbers<[1], [0], [0], [1], [0, 0, 1, 1], [], []>} : vector<16x4xbf16>, vector<4x256xbf16>, vector<16x256xf32> -> vector<16x256xf32>
    %82 = arith.addf %78, %81 : vector<16x256xf32>
    %83 = vector.extract_strided_slice %19 {offsets = [0, 1], sizes = [4, 255], strides = [1, 1]} : vector<4x256xbf16> to vector<4x255xbf16>
    %84 = vector.extract_strided_slice %19 {offsets = [0, 0], sizes = [4, 1], strides = [1, 1]} : vector<4x256xbf16> to vector<4x1xbf16>
    %85 = tpu.concatenate %83, %84 in 1 : vector<4x255xbf16>, vector<4x1xbf16> -> vector<4x256xbf16>
    %c14_i32_30 = arith.constant 14 : i32
    %86 = vector.broadcast %c14_i32_30 : i32 to vector<1x256xi32>
    %87 = arith.cmpi sle, %16, %86 : vector<1x256xi32>
    %cst_31 = arith.constant 0.000000e+00 : bf16
    %88 = vector.broadcast %cst_31 : bf16 to vector<4x256xbf16>
    %89 = vector.shape_cast %87 : vector<1x256xi1> to vector<1x256xi1>
    %90 = vector.broadcast %89 : vector<1x256xi1> to vector<4x256xi1>
    %91 = arith.select %90, %85, %88 : vector<4x256xi1>, vector<4x256xbf16>
    %c5 = arith.constant 5 : index
    %c0_32 = arith.constant 0 : index
    %c0_33 = arith.constant 0 : index
    %92 = vector.load %arg2[%c5, %c0_32, %c0_33] : memref<9x16x4xbf16, #tpu.memory_space<vmem>>, vector<1x16x4xbf16>
    %93 = vector.shape_cast %92 : vector<1x16x4xbf16> to vector<16x4xbf16>
    %cst_34 = arith.constant dense<0.000000e+00> : vector<16x256xf32>
    %94 = tpu.matmul %93, %91, %cst_34 {dimension_numbers = #tpu.dot_dimension_numbers<[1], [0], [0], [1], [0, 0, 1, 1], [], []>} : vector<16x4xbf16>, vector<4x256xbf16>, vector<16x256xf32> -> vector<16x256xf32>
    %95 = arith.addf %82, %94 : vector<16x256xf32>
    %96 = vector.extract_strided_slice %19 {offsets = [0, 15], sizes = [4, 241], strides = [1, 1]} : vector<4x256xbf16> to vector<4x241xbf16>
    %97 = vector.extract_strided_slice %19 {offsets = [0, 0], sizes = [4, 15], strides = [1, 1]} : vector<4x256xbf16> to vector<4x15xbf16>
    %98 = tpu.concatenate %96, %97 in 1 : vector<4x241xbf16>, vector<4x15xbf16> -> vector<4x256xbf16>
    %c240_i32 = arith.constant 240 : i32
    %99 = vector.broadcast %c240_i32 : i32 to vector<1x256xi32>
    %100 = arith.cmpi slt, %0, %99 : vector<1x256xi32>
    %c1_i32_35 = arith.constant 1 : i32
    %101 = vector.broadcast %c1_i32_35 : i32 to vector<1x256xi32>
    %102 = arith.cmpi sge, %16, %101 : vector<1x256xi32>
    %103 = arith.andi %100, %102 : vector<1x256xi1>
    %cst_36 = arith.constant 0.000000e+00 : bf16
    %104 = vector.broadcast %cst_36 : bf16 to vector<4x256xbf16>
    %105 = vector.shape_cast %103 : vector<1x256xi1> to vector<1x256xi1>
    %106 = vector.broadcast %105 : vector<1x256xi1> to vector<4x256xi1>
    %107 = arith.select %106, %98, %104 : vector<4x256xi1>, vector<4x256xbf16>
    %c6 = arith.constant 6 : index
    %c0_37 = arith.constant 0 : index
    %c0_38 = arith.constant 0 : index
    %108 = vector.load %arg2[%c6, %c0_37, %c0_38] : memref<9x16x4xbf16, #tpu.memory_space<vmem>>, vector<1x16x4xbf16>
    %109 = vector.shape_cast %108 : vector<1x16x4xbf16> to vector<16x4xbf16>
    %cst_39 = arith.constant dense<0.000000e+00> : vector<16x256xf32>
    %110 = tpu.matmul %109, %107, %cst_39 {dimension_numbers = #tpu.dot_dimension_numbers<[1], [0], [0], [1], [0, 0, 1, 1], [], []>} : vector<16x4xbf16>, vector<4x256xbf16>, vector<16x256xf32> -> vector<16x256xf32>
    %111 = arith.addf %95, %110 : vector<16x256xf32>
    %112 = vector.extract_strided_slice %19 {offsets = [0, 16], sizes = [4, 240], strides = [1, 1]} : vector<4x256xbf16> to vector<4x240xbf16>
    %113 = vector.extract_strided_slice %19 {offsets = [0, 0], sizes = [4, 16], strides = [1, 1]} : vector<4x256xbf16> to vector<4x16xbf16>
    %114 = tpu.concatenate %112, %113 in 1 : vector<4x240xbf16>, vector<4x16xbf16> -> vector<4x256xbf16>
    %c240_i32_40 = arith.constant 240 : i32
    %115 = vector.broadcast %c240_i32_40 : i32 to vector<1x256xi32>
    %116 = arith.cmpi slt, %0, %115 : vector<1x256xi32>
    %cst_41 = arith.constant 0.000000e+00 : bf16
    %117 = vector.broadcast %cst_41 : bf16 to vector<4x256xbf16>
    %118 = vector.shape_cast %116 : vector<1x256xi1> to vector<1x256xi1>
    %119 = vector.broadcast %118 : vector<1x256xi1> to vector<4x256xi1>
    %120 = arith.select %119, %114, %117 : vector<4x256xi1>, vector<4x256xbf16>
    %c7 = arith.constant 7 : index
    %c0_42 = arith.constant 0 : index
    %c0_43 = arith.constant 0 : index
    %121 = vector.load %arg2[%c7, %c0_42, %c0_43] : memref<9x16x4xbf16, #tpu.memory_space<vmem>>, vector<1x16x4xbf16>
    %122 = vector.shape_cast %121 : vector<1x16x4xbf16> to vector<16x4xbf16>
    %cst_44 = arith.constant dense<0.000000e+00> : vector<16x256xf32>
    %123 = tpu.matmul %122, %120, %cst_44 {dimension_numbers = #tpu.dot_dimension_numbers<[1], [0], [0], [1], [0, 0, 1, 1], [], []>} : vector<16x4xbf16>, vector<4x256xbf16>, vector<16x256xf32> -> vector<16x256xf32>
    %124 = arith.addf %111, %123 : vector<16x256xf32>
    %125 = vector.extract_strided_slice %19 {offsets = [0, 17], sizes = [4, 239], strides = [1, 1]} : vector<4x256xbf16> to vector<4x239xbf16>
    %126 = vector.extract_strided_slice %19 {offsets = [0, 0], sizes = [4, 17], strides = [1, 1]} : vector<4x256xbf16> to vector<4x17xbf16>
    %127 = tpu.concatenate %125, %126 in 1 : vector<4x239xbf16>, vector<4x17xbf16> -> vector<4x256xbf16>
    %c240_i32_45 = arith.constant 240 : i32
    %128 = vector.broadcast %c240_i32_45 : i32 to vector<1x256xi32>
    %129 = arith.cmpi slt, %0, %128 : vector<1x256xi32>
    %c14_i32_46 = arith.constant 14 : i32
    %130 = vector.broadcast %c14_i32_46 : i32 to vector<1x256xi32>
    %131 = arith.cmpi sle, %16, %130 : vector<1x256xi32>
    %132 = arith.andi %129, %131 : vector<1x256xi1>
    %cst_47 = arith.constant 0.000000e+00 : bf16
    %133 = vector.broadcast %cst_47 : bf16 to vector<4x256xbf16>
    %134 = vector.shape_cast %132 : vector<1x256xi1> to vector<1x256xi1>
    %135 = vector.broadcast %134 : vector<1x256xi1> to vector<4x256xi1>
    %136 = arith.select %135, %127, %133 : vector<4x256xi1>, vector<4x256xbf16>
    %c8 = arith.constant 8 : index
    %c0_48 = arith.constant 0 : index
    %c0_49 = arith.constant 0 : index
    %137 = vector.load %arg2[%c8, %c0_48, %c0_49] : memref<9x16x4xbf16, #tpu.memory_space<vmem>>, vector<1x16x4xbf16>
    %138 = vector.shape_cast %137 : vector<1x16x4xbf16> to vector<16x4xbf16>
    %cst_50 = arith.constant dense<0.000000e+00> : vector<16x256xf32>
    %139 = tpu.matmul %138, %136, %cst_50 {dimension_numbers = #tpu.dot_dimension_numbers<[1], [0], [0], [1], [0, 0, 1, 1], [], []>} : vector<16x4xbf16>, vector<4x256xbf16>, vector<16x256xf32> -> vector<16x256xf32>
    %140 = arith.addf %124, %139 : vector<16x256xf32>
    %c0_51 = arith.constant 0 : index
    %c0_52 = arith.constant 0 : index
    %141 = vector.load %arg3[%c0_51, %c0_52] : memref<16x1xf32, #tpu.memory_space<vmem>>, vector<16x1xf32>
    %142 = vector.broadcast %141 : vector<16x1xf32> to vector<16x256xf32>
    %143 = arith.addf %140, %142 : vector<16x256xf32>
    %cst_53 = arith.constant 0.000000e+00 : f32
    %144 = vector.broadcast %cst_53 : f32 to vector<16x256xf32>
    %145 = arith.maximumf %143, %144 : vector<16x256xf32>
    %146 = arith.truncf %145 : vector<16x256xf32> to vector<16x256xbf16>
    %cst_54 = arith.constant 0.000000e+00 : f32
    %147 = vector.broadcast %cst_54 : f32 to vector<16x256xf32>
    %148 = vector.extract_strided_slice %146 {offsets = [0, 239], sizes = [16, 17], strides = [1, 1]} : vector<16x256xbf16> to vector<16x17xbf16>
    %149 = vector.extract_strided_slice %146 {offsets = [0, 0], sizes = [16, 239], strides = [1, 1]} : vector<16x256xbf16> to vector<16x239xbf16>
    %150 = tpu.concatenate %148, %149 in 1 : vector<16x17xbf16>, vector<16x239xbf16> -> vector<16x256xbf16>
    %c16_i32_55 = arith.constant 16 : i32
    %151 = vector.broadcast %c16_i32_55 : i32 to vector<1x256xi32>
    %152 = arith.cmpi sge, %0, %151 : vector<1x256xi32>
    %c1_i32_56 = arith.constant 1 : i32
    %153 = vector.broadcast %c1_i32_56 : i32 to vector<1x256xi32>
    %154 = arith.cmpi sge, %16, %153 : vector<1x256xi32>
    %155 = arith.andi %152, %154 : vector<1x256xi1>
    %cst_57 = arith.constant 0.000000e+00 : bf16
    %156 = vector.broadcast %cst_57 : bf16 to vector<16x256xbf16>
    %157 = vector.shape_cast %155 : vector<1x256xi1> to vector<1x256xi1>
    %158 = vector.broadcast %157 : vector<1x256xi1> to vector<16x256xi1>
    %159 = arith.select %158, %150, %156 : vector<16x256xi1>, vector<16x256xbf16>
    %c0_58 = arith.constant 0 : index
    %c0_59 = arith.constant 0 : index
    %c0_60 = arith.constant 0 : index
    %160 = vector.load %arg4[%c0_58, %c0_59, %c0_60] : memref<9x16x16xbf16, #tpu.memory_space<vmem>>, vector<1x16x16xbf16>
    %161 = vector.shape_cast %160 : vector<1x16x16xbf16> to vector<16x16xbf16>
    %cst_61 = arith.constant dense<0.000000e+00> : vector<16x256xf32>
    %162 = tpu.matmul %161, %159, %cst_61 {dimension_numbers = #tpu.dot_dimension_numbers<[1], [0], [0], [1], [0, 0, 1, 1], [], []>} : vector<16x16xbf16>, vector<16x256xbf16>, vector<16x256xf32> -> vector<16x256xf32>
    %163 = arith.addf %147, %162 : vector<16x256xf32>
    %164 = vector.extract_strided_slice %146 {offsets = [0, 240], sizes = [16, 16], strides = [1, 1]} : vector<16x256xbf16> to vector<16x16xbf16>
    %165 = vector.extract_strided_slice %146 {offsets = [0, 0], sizes = [16, 240], strides = [1, 1]} : vector<16x256xbf16> to vector<16x240xbf16>
    %166 = tpu.concatenate %164, %165 in 1 : vector<16x16xbf16>, vector<16x240xbf16> -> vector<16x256xbf16>
    %c16_i32_62 = arith.constant 16 : i32
    %167 = vector.broadcast %c16_i32_62 : i32 to vector<1x256xi32>
    %168 = arith.cmpi sge, %0, %167 : vector<1x256xi32>
    %cst_63 = arith.constant 0.000000e+00 : bf16
    %169 = vector.broadcast %cst_63 : bf16 to vector<16x256xbf16>
    %170 = vector.shape_cast %168 : vector<1x256xi1> to vector<1x256xi1>
    %171 = vector.broadcast %170 : vector<1x256xi1> to vector<16x256xi1>
    %172 = arith.select %171, %166, %169 : vector<16x256xi1>, vector<16x256xbf16>
    %c1_64 = arith.constant 1 : index
    %c0_65 = arith.constant 0 : index
    %c0_66 = arith.constant 0 : index
    %173 = vector.load %arg4[%c1_64, %c0_65, %c0_66] : memref<9x16x16xbf16, #tpu.memory_space<vmem>>, vector<1x16x16xbf16>
    %174 = vector.shape_cast %173 : vector<1x16x16xbf16> to vector<16x16xbf16>
    %cst_67 = arith.constant dense<0.000000e+00> : vector<16x256xf32>
    %175 = tpu.matmul %174, %172, %cst_67 {dimension_numbers = #tpu.dot_dimension_numbers<[1], [0], [0], [1], [0, 0, 1, 1], [], []>} : vector<16x16xbf16>, vector<16x256xbf16>, vector<16x256xf32> -> vector<16x256xf32>
    %176 = arith.addf %163, %175 : vector<16x256xf32>
    %177 = vector.extract_strided_slice %146 {offsets = [0, 241], sizes = [16, 15], strides = [1, 1]} : vector<16x256xbf16> to vector<16x15xbf16>
    %178 = vector.extract_strided_slice %146 {offsets = [0, 0], sizes = [16, 241], strides = [1, 1]} : vector<16x256xbf16> to vector<16x241xbf16>
    %179 = tpu.concatenate %177, %178 in 1 : vector<16x15xbf16>, vector<16x241xbf16> -> vector<16x256xbf16>
    %c16_i32_68 = arith.constant 16 : i32
    %180 = vector.broadcast %c16_i32_68 : i32 to vector<1x256xi32>
    %181 = arith.cmpi sge, %0, %180 : vector<1x256xi32>
    %c14_i32_69 = arith.constant 14 : i32
    %182 = vector.broadcast %c14_i32_69 : i32 to vector<1x256xi32>
    %183 = arith.cmpi sle, %16, %182 : vector<1x256xi32>
    %184 = arith.andi %181, %183 : vector<1x256xi1>
    %cst_70 = arith.constant 0.000000e+00 : bf16
    %185 = vector.broadcast %cst_70 : bf16 to vector<16x256xbf16>
    %186 = vector.shape_cast %184 : vector<1x256xi1> to vector<1x256xi1>
    %187 = vector.broadcast %186 : vector<1x256xi1> to vector<16x256xi1>
    %188 = arith.select %187, %179, %185 : vector<16x256xi1>, vector<16x256xbf16>
    %c2_71 = arith.constant 2 : index
    %c0_72 = arith.constant 0 : index
    %c0_73 = arith.constant 0 : index
    %189 = vector.load %arg4[%c2_71, %c0_72, %c0_73] : memref<9x16x16xbf16, #tpu.memory_space<vmem>>, vector<1x16x16xbf16>
    %190 = vector.shape_cast %189 : vector<1x16x16xbf16> to vector<16x16xbf16>
    %cst_74 = arith.constant dense<0.000000e+00> : vector<16x256xf32>
    %191 = tpu.matmul %190, %188, %cst_74 {dimension_numbers = #tpu.dot_dimension_numbers<[1], [0], [0], [1], [0, 0, 1, 1], [], []>} : vector<16x16xbf16>, vector<16x256xbf16>, vector<16x256xf32> -> vector<16x256xf32>
    %192 = arith.addf %176, %191 : vector<16x256xf32>
    %193 = vector.extract_strided_slice %146 {offsets = [0, 255], sizes = [16, 1], strides = [1, 1]} : vector<16x256xbf16> to vector<16x1xbf16>
    %194 = vector.extract_strided_slice %146 {offsets = [0, 0], sizes = [16, 255], strides = [1, 1]} : vector<16x256xbf16> to vector<16x255xbf16>
    %195 = tpu.concatenate %193, %194 in 1 : vector<16x1xbf16>, vector<16x255xbf16> -> vector<16x256xbf16>
    %c1_i32_75 = arith.constant 1 : i32
    %196 = vector.broadcast %c1_i32_75 : i32 to vector<1x256xi32>
    %197 = arith.cmpi sge, %16, %196 : vector<1x256xi32>
    %cst_76 = arith.constant 0.000000e+00 : bf16
    %198 = vector.broadcast %cst_76 : bf16 to vector<16x256xbf16>
    %199 = vector.shape_cast %197 : vector<1x256xi1> to vector<1x256xi1>
    %200 = vector.broadcast %199 : vector<1x256xi1> to vector<16x256xi1>
    %201 = arith.select %200, %195, %198 : vector<16x256xi1>, vector<16x256xbf16>
    %c3_77 = arith.constant 3 : index
    %c0_78 = arith.constant 0 : index
    %c0_79 = arith.constant 0 : index
    %202 = vector.load %arg4[%c3_77, %c0_78, %c0_79] : memref<9x16x16xbf16, #tpu.memory_space<vmem>>, vector<1x16x16xbf16>
    %203 = vector.shape_cast %202 : vector<1x16x16xbf16> to vector<16x16xbf16>
    %cst_80 = arith.constant dense<0.000000e+00> : vector<16x256xf32>
    %204 = tpu.matmul %203, %201, %cst_80 {dimension_numbers = #tpu.dot_dimension_numbers<[1], [0], [0], [1], [0, 0, 1, 1], [], []>} : vector<16x16xbf16>, vector<16x256xbf16>, vector<16x256xf32> -> vector<16x256xf32>
    %205 = arith.addf %192, %204 : vector<16x256xf32>
    %c4_81 = arith.constant 4 : index
    %c0_82 = arith.constant 0 : index
    %c0_83 = arith.constant 0 : index
    %206 = vector.load %arg4[%c4_81, %c0_82, %c0_83] : memref<9x16x16xbf16, #tpu.memory_space<vmem>>, vector<1x16x16xbf16>
    %207 = vector.shape_cast %206 : vector<1x16x16xbf16> to vector<16x16xbf16>
    %cst_84 = arith.constant dense<0.000000e+00> : vector<16x256xf32>
    %208 = tpu.matmul %207, %146, %cst_84 {dimension_numbers = #tpu.dot_dimension_numbers<[1], [0], [0], [1], [0, 0, 1, 1], [], []>} : vector<16x16xbf16>, vector<16x256xbf16>, vector<16x256xf32> -> vector<16x256xf32>
    %209 = arith.addf %205, %208 : vector<16x256xf32>
    %210 = vector.extract_strided_slice %146 {offsets = [0, 1], sizes = [16, 255], strides = [1, 1]} : vector<16x256xbf16> to vector<16x255xbf16>
    %211 = vector.extract_strided_slice %146 {offsets = [0, 0], sizes = [16, 1], strides = [1, 1]} : vector<16x256xbf16> to vector<16x1xbf16>
    %212 = tpu.concatenate %210, %211 in 1 : vector<16x255xbf16>, vector<16x1xbf16> -> vector<16x256xbf16>
    %c14_i32_85 = arith.constant 14 : i32
    %213 = vector.broadcast %c14_i32_85 : i32 to vector<1x256xi32>
    %214 = arith.cmpi sle, %16, %213 : vector<1x256xi32>
    %cst_86 = arith.constant 0.000000e+00 : bf16
    %215 = vector.broadcast %cst_86 : bf16 to vector<16x256xbf16>
    %216 = vector.shape_cast %214 : vector<1x256xi1> to vector<1x256xi1>
    %217 = vector.broadcast %216 : vector<1x256xi1> to vector<16x256xi1>
    %218 = arith.select %217, %212, %215 : vector<16x256xi1>, vector<16x256xbf16>
    %c5_87 = arith.constant 5 : index
    %c0_88 = arith.constant 0 : index
    %c0_89 = arith.constant 0 : index
    %219 = vector.load %arg4[%c5_87, %c0_88, %c0_89] : memref<9x16x16xbf16, #tpu.memory_space<vmem>>, vector<1x16x16xbf16>
    %220 = vector.shape_cast %219 : vector<1x16x16xbf16> to vector<16x16xbf16>
    %cst_90 = arith.constant dense<0.000000e+00> : vector<16x256xf32>
    %221 = tpu.matmul %220, %218, %cst_90 {dimension_numbers = #tpu.dot_dimension_numbers<[1], [0], [0], [1], [0, 0, 1, 1], [], []>} : vector<16x16xbf16>, vector<16x256xbf16>, vector<16x256xf32> -> vector<16x256xf32>
    %222 = arith.addf %209, %221 : vector<16x256xf32>
    %223 = vector.extract_strided_slice %146 {offsets = [0, 15], sizes = [16, 241], strides = [1, 1]} : vector<16x256xbf16> to vector<16x241xbf16>
    %224 = vector.extract_strided_slice %146 {offsets = [0, 0], sizes = [16, 15], strides = [1, 1]} : vector<16x256xbf16> to vector<16x15xbf16>
    %225 = tpu.concatenate %223, %224 in 1 : vector<16x241xbf16>, vector<16x15xbf16> -> vector<16x256xbf16>
    %c240_i32_91 = arith.constant 240 : i32
    %226 = vector.broadcast %c240_i32_91 : i32 to vector<1x256xi32>
    %227 = arith.cmpi slt, %0, %226 : vector<1x256xi32>
    %c1_i32_92 = arith.constant 1 : i32
    %228 = vector.broadcast %c1_i32_92 : i32 to vector<1x256xi32>
    %229 = arith.cmpi sge, %16, %228 : vector<1x256xi32>
    %230 = arith.andi %227, %229 : vector<1x256xi1>
    %cst_93 = arith.constant 0.000000e+00 : bf16
    %231 = vector.broadcast %cst_93 : bf16 to vector<16x256xbf16>
    %232 = vector.shape_cast %230 : vector<1x256xi1> to vector<1x256xi1>
    %233 = vector.broadcast %232 : vector<1x256xi1> to vector<16x256xi1>
    %234 = arith.select %233, %225, %231 : vector<16x256xi1>, vector<16x256xbf16>
    %c6_94 = arith.constant 6 : index
    %c0_95 = arith.constant 0 : index
    %c0_96 = arith.constant 0 : index
    %235 = vector.load %arg4[%c6_94, %c0_95, %c0_96] : memref<9x16x16xbf16, #tpu.memory_space<vmem>>, vector<1x16x16xbf16>
    %236 = vector.shape_cast %235 : vector<1x16x16xbf16> to vector<16x16xbf16>
    %cst_97 = arith.constant dense<0.000000e+00> : vector<16x256xf32>
    %237 = tpu.matmul %236, %234, %cst_97 {dimension_numbers = #tpu.dot_dimension_numbers<[1], [0], [0], [1], [0, 0, 1, 1], [], []>} : vector<16x16xbf16>, vector<16x256xbf16>, vector<16x256xf32> -> vector<16x256xf32>
    %238 = arith.addf %222, %237 : vector<16x256xf32>
    %239 = vector.extract_strided_slice %146 {offsets = [0, 16], sizes = [16, 240], strides = [1, 1]} : vector<16x256xbf16> to vector<16x240xbf16>
    %240 = vector.extract_strided_slice %146 {offsets = [0, 0], sizes = [16, 16], strides = [1, 1]} : vector<16x256xbf16> to vector<16x16xbf16>
    %241 = tpu.concatenate %239, %240 in 1 : vector<16x240xbf16>, vector<16x16xbf16> -> vector<16x256xbf16>
    %c240_i32_98 = arith.constant 240 : i32
    %242 = vector.broadcast %c240_i32_98 : i32 to vector<1x256xi32>
    %243 = arith.cmpi slt, %0, %242 : vector<1x256xi32>
    %cst_99 = arith.constant 0.000000e+00 : bf16
    %244 = vector.broadcast %cst_99 : bf16 to vector<16x256xbf16>
    %245 = vector.shape_cast %243 : vector<1x256xi1> to vector<1x256xi1>
    %246 = vector.broadcast %245 : vector<1x256xi1> to vector<16x256xi1>
    %247 = arith.select %246, %241, %244 : vector<16x256xi1>, vector<16x256xbf16>
    %c7_100 = arith.constant 7 : index
    %c0_101 = arith.constant 0 : index
    %c0_102 = arith.constant 0 : index
    %248 = vector.load %arg4[%c7_100, %c0_101, %c0_102] : memref<9x16x16xbf16, #tpu.memory_space<vmem>>, vector<1x16x16xbf16>
    %249 = vector.shape_cast %248 : vector<1x16x16xbf16> to vector<16x16xbf16>
    %cst_103 = arith.constant dense<0.000000e+00> : vector<16x256xf32>
    %250 = tpu.matmul %249, %247, %cst_103 {dimension_numbers = #tpu.dot_dimension_numbers<[1], [0], [0], [1], [0, 0, 1, 1], [], []>} : vector<16x16xbf16>, vector<16x256xbf16>, vector<16x256xf32> -> vector<16x256xf32>
    %251 = arith.addf %238, %250 : vector<16x256xf32>
    %252 = vector.extract_strided_slice %146 {offsets = [0, 17], sizes = [16, 239], strides = [1, 1]} : vector<16x256xbf16> to vector<16x239xbf16>
    %253 = vector.extract_strided_slice %146 {offsets = [0, 0], sizes = [16, 17], strides = [1, 1]} : vector<16x256xbf16> to vector<16x17xbf16>
    %254 = tpu.concatenate %252, %253 in 1 : vector<16x239xbf16>, vector<16x17xbf16> -> vector<16x256xbf16>
    %c240_i32_104 = arith.constant 240 : i32
    %255 = vector.broadcast %c240_i32_104 : i32 to vector<1x256xi32>
    %256 = arith.cmpi slt, %0, %255 : vector<1x256xi32>
    %c14_i32_105 = arith.constant 14 : i32
    %257 = vector.broadcast %c14_i32_105 : i32 to vector<1x256xi32>
    %258 = arith.cmpi sle, %16, %257 : vector<1x256xi32>
    %259 = arith.andi %256, %258 : vector<1x256xi1>
    %cst_106 = arith.constant 0.000000e+00 : bf16
    %260 = vector.broadcast %cst_106 : bf16 to vector<16x256xbf16>
    %261 = vector.shape_cast %259 : vector<1x256xi1> to vector<1x256xi1>
    %262 = vector.broadcast %261 : vector<1x256xi1> to vector<16x256xi1>
    %263 = arith.select %262, %254, %260 : vector<16x256xi1>, vector<16x256xbf16>
    %c8_107 = arith.constant 8 : index
    %c0_108 = arith.constant 0 : index
    %c0_109 = arith.constant 0 : index
    %264 = vector.load %arg4[%c8_107, %c0_108, %c0_109] : memref<9x16x16xbf16, #tpu.memory_space<vmem>>, vector<1x16x16xbf16>
    %265 = vector.shape_cast %264 : vector<1x16x16xbf16> to vector<16x16xbf16>
    %cst_110 = arith.constant dense<0.000000e+00> : vector<16x256xf32>
    %266 = tpu.matmul %265, %263, %cst_110 {dimension_numbers = #tpu.dot_dimension_numbers<[1], [0], [0], [1], [0, 0, 1, 1], [], []>} : vector<16x16xbf16>, vector<16x256xbf16>, vector<16x256xf32> -> vector<16x256xf32>
    %267 = arith.addf %251, %266 : vector<16x256xf32>
    %c0_111 = arith.constant 0 : index
    %c0_112 = arith.constant 0 : index
    %268 = vector.load %arg5[%c0_111, %c0_112] : memref<16x1xf32, #tpu.memory_space<vmem>>, vector<16x1xf32>
    %269 = vector.broadcast %268 : vector<16x1xf32> to vector<16x256xf32>
    %270 = arith.addf %267, %269 : vector<16x256xf32>
    %cst_113 = arith.constant 0.000000e+00 : f32
    %271 = vector.broadcast %cst_113 : f32 to vector<16x256xf32>
    %272 = arith.maximumf %270, %271 : vector<16x256xf32>
    %c0_114 = arith.constant 0 : index
    %c0_115 = arith.constant 0 : index
    %c0_116 = arith.constant 0 : index
    %273 = vector.load %arg7[%c0_114, %c0_115, %c0_116] : memref<1x16x256xf32, #tpu.memory_space<vmem>>, vector<1x16x256xf32>
    %274 = vector.shape_cast %273 : vector<1x16x256xf32> to vector<16x256xf32>
    %275 = vector.shape_cast %272 : vector<16x256xf32> to vector<1x16x256xf32>
    tpu.vector_store %arg7[%c0_114, %c0_115, %c0_116], %275 {strides = array<i32>} : memref<1x16x256xf32, #tpu.memory_space<vmem>>, vector<1x16x256xf32>,
    %276 = vector.extract_strided_slice %272 {offsets = [0, 1], sizes = [16, 255], strides = [1, 1]} : vector<16x256xf32> to vector<16x255xf32>
    %277 = vector.extract_strided_slice %272 {offsets = [0, 0], sizes = [16, 1], strides = [1, 1]} : vector<16x256xf32> to vector<16x1xf32>
    %278 = tpu.concatenate %276, %277 in 1 : vector<16x255xf32>, vector<16x1xf32> -> vector<16x256xf32>
    %279 = arith.maximumf %272, %278 : vector<16x256xf32>
    %280 = vector.extract_strided_slice %279 {offsets = [0, 16], sizes = [16, 240], strides = [1, 1]} : vector<16x256xf32> to vector<16x240xf32>
    %281 = vector.extract_strided_slice %279 {offsets = [0, 0], sizes = [16, 16], strides = [1, 1]} : vector<16x256xf32> to vector<16x16xf32>
    %282 = tpu.concatenate %280, %281 in 1 : vector<16x240xf32>, vector<16x16xf32> -> vector<16x256xf32>
    %283 = arith.maximumf %279, %282 : vector<16x256xf32>
    %c0_117 = arith.constant 0 : index
    %c0_118 = arith.constant 0 : index
    %284 = vector.load %arg6[%c0_117, %c0_118] : memref<256x64xf32, #tpu.memory_space<vmem>>, vector<256x64xf32>
    %cst_119 = arith.constant dense<0.000000e+00> : vector<16x64xf32>
    %285 = tpu.matmul %283, %284, %cst_119 {dimension_numbers = #tpu.dot_dimension_numbers<[1], [0], [0], [1], [0, 0, 1, 1], [], []>} : vector<16x256xf32>, vector<256x64xf32>, vector<16x64xf32> -> vector<16x64xf32>
    %c0_120 = arith.constant 0 : index
    %c0_121 = arith.constant 0 : index
    %c0_122 = arith.constant 0 : index
    %286 = vector.load %arg8[%c0_120, %c0_121, %c0_122] : memref<1x16x64xf32, #tpu.memory_space<vmem>>, vector<1x16x64xf32>
    %287 = vector.shape_cast %286 : vector<1x16x64xf32> to vector<16x64xf32>
    %288 = vector.shape_cast %285 : vector<16x64xf32> to vector<1x16x64xf32>
    tpu.vector_store %arg8[%c0_120, %c0_121, %c0_122], %288 {strides = array<i32>} : memref<1x16x64xf32, #tpu.memory_space<vmem>>, vector<1x16x64xf32>,
    return
  }
  func.func @transform_0(%arg0: i32) -> (i32, i32, i32) {
    %c0_i32 = arith.constant 0 : i32
    %c0_i32_0 = arith.constant 0 : i32
    %c0_i32_1 = arith.constant 0 : i32
    return %arg0, %c0_i32, %c0_i32_0 : i32, i32, i32
  }
  func.func @transform_1(%arg0: i32) -> (i32, i32, i32) {
    %c0_i32 = arith.constant 0 : i32
    %c0_i32_0 = arith.constant 0 : i32
    %c0_i32_1 = arith.constant 0 : i32
    %c0_i32_2 = arith.constant 0 : i32
    return %c0_i32, %c0_i32_0, %c0_i32_1 : i32, i32, i32
  }
  func.func @transform_2(%arg0: i32) -> (i32, i32) {
    %c0_i32 = arith.constant 0 : i32
    %c0_i32_0 = arith.constant 0 : i32
    %c0_i32_1 = arith.constant 0 : i32
    return %c0_i32, %c0_i32_0 : i32, i32
  }
  func.func @transform_3(%arg0: i32) -> (i32, i32, i32) {
    %c0_i32 = arith.constant 0 : i32
    %c0_i32_0 = arith.constant 0 : i32
    %c0_i32_1 = arith.constant 0 : i32
    %c0_i32_2 = arith.constant 0 : i32
    return %c0_i32, %c0_i32_0, %c0_i32_1 : i32, i32, i32
  }
  func.func @transform_4(%arg0: i32) -> (i32, i32) {
    %c0_i32 = arith.constant 0 : i32
    %c0_i32_0 = arith.constant 0 : i32
    %c0_i32_1 = arith.constant 0 : i32
    return %c0_i32, %c0_i32_0 : i32, i32
  }
  func.func @transform_5(%arg0: i32) -> (i32, i32) {
    %c0_i32 = arith.constant 0 : i32
    %c0_i32_0 = arith.constant 0 : i32
    %c0_i32_1 = arith.constant 0 : i32
    return %c0_i32, %c0_i32_0 : i32, i32
  }
  func.func @transform_6(%arg0: i32) -> (i32, i32, i32) {
    %c0_i32 = arith.constant 0 : i32
    %c0_i32_0 = arith.constant 0 : i32
    %c0_i32_1 = arith.constant 0 : i32
    return %arg0, %c0_i32, %c0_i32_0 : i32, i32, i32
  }
  func.func @transform_7(%arg0: i32) -> (i32, i32, i32) {
    %c0_i32 = arith.constant 0 : i32
    %c0_i32_0 = arith.constant 0 : i32
    %c0_i32_1 = arith.constant 0 : i32
    return %arg0, %c0_i32, %c0_i32_0 : i32, i32, i32
  }
}

</mosaic_0001>

<bundles_post_ra>
// kernel: downconv_forward.1
= control target key start
LH: loop header
LB: loop body
LE: loop exit
PB: predicated region body
PF: predicated region fallthrough
CT: control target
= control target key end

     0   :  { %s2414_s24 = smov 0   ;;  %s3029_s0 = inlined_call_operand.vmem [shape: f32[2,4,256], index: 0, kind: input, shape index: {}]   ;;  %s3030_s1 = inlined_call_operand.vmem [shape: bf16[9,16,4], index: 1, kind: input, shape index: {}]   ;;  %s3031_s2 = inlined_call_operand.vmem [shape: f32[16,1], index: 2, kind: input, shape index: {}]   ;;  %s3032_s3 = inlined_call_operand.vmem [shape: bf16[9,16,16], index: 3, kind: input, shape index: {}]   ;;  %s3033_s4 = inlined_call_operand.vmem [shape: f32[16,1], index: 4, kind: input, shape index: {}]   ;;  %s3034_s5 = inlined_call_operand.vmem [shape: f32[256,64], index: 5, kind: input, shape index: {}]   ;;  %s3035_s6 = inlined_call_operand.vmem [shape: f32[2,16,256], index: 6, kind: output, shape index: {0}]   ;;  %s3036_s7 = inlined_call_operand.vmem [shape: f32[2,16,64], index: 7, kind: output, shape index: {1}]  }
   0x1 LB: > { %s2062_s25 = sadd.s32 4294967295, %s2362_s24   ;;  %p2066_p0 = scmp.ge.s32.totalorder %s2362_s24, 1  ;;  %s2362_s24 = sphi %s2414_s24, %s18_s24  }
   0x2   : > { %p240_p1 = scmp.lt.s32.totalorder %s2362_s24, 3 }
   0x4   : > { %p241_p2 = pnand %p2066_p0, %p240_p1 }
   0x5   : > { %p277_p3 = scmp.lt.s32.totalorder (!%p241_p2), %s2062_s25, 1  ;;  %v2364_v0 = vmov (!%p241_p2), 0   ;;  %s2365_s30 = smov (!%p241_p2), 15   ;;  %v1155_v5 = vld [vmem:[%s3031_s2] sm:$0xff] (!%p241_p2)  ;;  %v1156_v6 = vld [vmem:[%s3031_s2 + $0x8] sm:$0xff] (!%p241_p2)  ;;  %v295_v7 = vlaneseq (!%p241_p2)  ;;  %vm3038_vm8 = vcmask (!%p241_p2), 121856  }
   0x6   : > { %244 = sbr.rel (%p241_p2) target bundleno = 1339 (0x53b), region = 44  ;;  %600 = vmatprep.mubr.bf16.mxu0 (!%p241_p2), %v2364_v0  ;;  %449 = vmatprep.mubr.bf16.mxu1 (!%p241_p2), %v2364_v0  ;;  %s2366_s8 = smov (!%p241_p2), 1   ;;  %vm3037_vm9 = vcmask (!%p241_p2), 7168   ;;  %v3063_v28 = vmov (!%p241_p2), 0  ;;  %v3065_v29 = vmov (!%p241_p2), 0  ;;  %vm3041_vm14 = vcmask (!%p241_p2), 1041408  }
   0x7   : > { %2315 = vset.pattern.permute.xlu0 (!%p241_p2), %v2364_v0  ;;  %2316 = vset.pattern.permute.xlu1 (!%p241_p2), %v2364_v0  ;;  %s2367_s9 = smov (!%p241_p2), 127   ;;  %s2368_s10 = smov (!%p241_p2), 113   ;;  %v296_v8 = vand.u32 (!%p241_p2), 127, %v295_v7  ;;  %v355_v16 = vshrl.u32 (!%p241_p2), %v295_v7, 7  ;;  %vm3039_vm15 = vmmov (!%p241_p2), 1   ;;  %v2338_v42 = vld [vmem:[%s3030_s1 + $0x10] sm:$0xff] (!%p241_p2)  }
   0x8   : > { %s2369_s11 = smov (!%p241_p2), 16   ;;  %s2370_s12 = smov (!%p241_p2), 112   ;;  %v3075_v61 = vmov (!%p241_p2), 0  ;;  %v2349_v27 = vld [vmem:[%s3032_s3 + $0x10] sm:$0xff] (!%p241_p2)  }
   0x9   : > { %s2371_s13 = smov (!%p241_p2), 17   ;;  %s2372_s14 = smov (!%p241_p2), 111   ;;  %v2474_v9 = vadd.s32 (!%p241_p2), 128, %v296_v8  ;;  %v302_v10 = vand.u32 (!%p241_p2), 15, %v296_v8  ;;  %vm342_vm0 = vcmp.ge.s32.totalorder (!%p241_p2), %v296_v8, 16  ;;  %v2502_v17 = vsub.s32 (!%p241_p2), 0, %v355_v16 }
   0xa   : > { %v2504_v18 = vsub.s32 (!%p241_p2), 4, %v355_v16 }
   0xb   : > { %v309_v11 = vand.u32 (!%p241_p2), 15, %v2474_v9  ;;  %vm2477_vm1 = vcmp.le.s32.totalorder (!%p241_p2), %v302_v10, 14  ;;  %vm2488_vm4 = vcmp.ge.s32.totalorder (!%p241_p2), %v302_v10, 1 }
   0xc   : > { %vm531_vm3 = vmand (!%p241_p2), %vm342_vm0, %vm2477_vm1 }
   0xd   : > { %s3159_s25 = smov (!%p277_p3, %s2062_s25), 1  ;;  %vm2481_vm2 = vcmp.le.s32.totalorder %v309_v11, 14  ;;  %vm2492_vm5 = vcmp.ge.s32.totalorder %v309_v11, 1 }
   0xe   : > { %s2160_s26 = sshll.u32 %s3159_s25, 3  ;;  %vm537_vm6 = vmpackc.low %vm2481_vm2, %vm531_vm3 }
   0xf   : > { %s281_s29 = scalar_lea.vmem %s3029_s0, %s2160_s26  ;;  %vm631_vm7 = vmpackc.low %vm2492_vm5, %vm2488_vm4  ;;  %v538_v19 = vsel %vm537_vm6, 65537, %v2364_v0  ;;  %vm3040_vm6 = vcmask 31744  }
  0x10   : > { %v322_v1 = vld [vmem:[%s281_s29] sm:$0xff]  ;;  %v632_v20 = vsel %vm631_vm7, 65537, %v2364_v0  ;;  %v546_v21 = vrot.slane %v538_v19, %v2504_v18  ;;  %v542_v24 = vrot.slane %v538_v19, %v2502_v17  ;;  %vm384_vm3 = vmpackc.low %vm3039_vm15, %vm342_vm0 }
  0x11   : > { %v324_v2 = vcombine.high %v322_v1, %v322_v1  ;;  %v2438_v4 = vpack.c.bf16 %v322_v1, %v322_v1  ;;  %v636_v22 = vrot.slane %v632_v20, %v2502_v17  ;;  %v640_v23 = vrot.slane %v632_v20, %v2504_v18  ;;  %vm789_vm7 = vmpackc.low %vm2481_vm2, %vm2477_vm1  ;;  %v2348_v20 = vld [vmem:[%s3032_s3] sm:$0xff]  }
  0x12   : > { %vm2512_vm10 = vcmp.ne.s16.totalorder %v546_v21, 0  ;;  %vm2524_vm13 = vcmp.ne.s16.totalorder %v542_v24, 0  ;;  %v385_v45 = vsel %vm384_vm3, 65537, %v2364_v0  ;;  %v790_v48 = vsel %vm789_vm7, 65537, %v2364_v0 }
  0x13   : > { %v2432_v3 = vpack.c.bf16 %v324_v2, %v324_v2  ;;  %vm2516_vm11 = vcmp.ne.s16.totalorder %v636_v22, 0  ;;  %vm2520_vm12 = vcmp.ne.s16.totalorder %v640_v23, 0  ;;  %v393_v49 = vrot.slane %v385_v45, %v2504_v18  ;;  %v2339_v2 = vld [vmem:[%s3030_s1 + $0x18] sm:$0xff]  }
  0x14   : > { %v3064_v28 = vsel %vm2516_vm11, 4294967295, %v3063_v28  ;;  %v3066_v29 = vsel %vm2520_vm12, 4294967295, %v3065_v29  ;;  %v389_v50 = vrot.slane %v385_v45, %v2502_v17  ;;  %v798_v53 = vrot.slane %v790_v48, %v2504_v18 }
  0x15   : > { %517 = vrot.lane.b32.xlu0 %v2432_v3, %s2365_s30  ;;  %615 = vrot.lane.b32.xlu1 %v2432_v3, %s2366_s8  ;;  %vm3042_vm3 = vcmask 130048   ;;  %vm3043_vm7 = vcmp.lt.s32.totalorder %v2474_v9, 240  ;;  %v794_v19 = vrot.slane %v790_v48, %v2502_v17  ;;  %v2341_v48 = vld [vmem:[%s3030_s1 + $0x28] sm:$0xff]  }
  0x16   : > { %vm2584_vm15 = vcmp.ne.s16.totalorder %v389_v50, 0 }
  0x19   : > { %519 = vrot.lane.b32.xlu0 %v2438_v4, %s2365_s30  ;;  %617 = vrot.lane.b32.xlu1 %v2438_v4, %s2366_s8 }
  0x1d   : > { %775 = vrot.lane.b32.xlu1 %v2432_v3, %s2367_s9  ;;  %773 = vrot.lane.b32.xlu0 %v2438_v4, %s2367_s9 }
  0x21   : > { %869 = vrot.lane.b32.xlu1 %v2432_v3, %s2368_s10  ;;  %867 = vrot.lane.b32.xlu0 %v2438_v4, %s2368_s10 }
  0x25   : > { %370 = vrot.lane.b32.xlu1 %v2438_v4, %s2369_s11  ;;  %368 = vrot.lane.b32.xlu0 %v2432_v3, %s2369_s11 }
  0x29   : > { %967 = vrot.lane.b32.xlu1 %v2432_v3, %s2370_s12  ;;  %965 = vrot.lane.b32.xlu0 %v2438_v4, %s2370_s12 }
  0x2d   : > { %332 = vrot.lane.b32.xlu1 %v2438_v4, %s2371_s13  ;;  %329 = vrot.lane.b32.xlu0 %v2432_v3, %s2371_s13 }
  0x31   : > { %1061 = vrot.lane.b32.xlu1 %v2432_v3, %s2372_s14  ;;  %1059 = vrot.lane.b32.xlu0 %v2438_v4, %s2372_s14 }
  0x35   : > { %1159 = vperm.xlu0 %2315, %v1155_v5   ;;  %1164 = vperm.xlu1 %2316, %v1156_v6   ;;  %v2342_v6 = vld [vmem:[%s3030_s1 + $0x8] sm:$0xff]  }
  0x87   : > { %v518_v25 = vpop.permute.xlu0 %517  ;;  %v616_v26 = vpop.permute.xlu1 %615 }
  0x8b   : > { %v520_v31 = vpop.permute.xlu0 %519  ;;  %v618_v32 = vpop.permute.xlu1 %617 }
  0x8c   : > { %v527_v33 = vsel %vm3038_vm8, %v518_v25, %v520_v31  ;;  %v522_v34 = vsel %vm3038_vm8, %v520_v31, %v518_v25  ;;  %v620_v35 = vsel %vm3037_vm9, %v618_v32, %v616_v26  ;;  %v625_v36 = vsel %vm3037_vm9, %v616_v26, %v618_v32  ;;  %vm2559_vm9 = vmand %vm342_vm0, %vm2488_vm4 }
  0x8d   : > { %v550_v37 = vsel %vm2512_vm10, %v522_v34, 0  ;;  %v643_v38 = vsel %vm2516_vm11, %v625_v36, 0  ;;  %v644_v39 = vsel %vm2520_vm12, %v620_v35, 0  ;;  %v549_v40 = vsel %vm2524_vm13, %v527_v33, 0  ;;  %vm352_vm0 = vmpackc.low %vm2492_vm5, %vm2559_vm9  ;;  %v2340_v36 = vld [vmem:[%s3030_s1 + $0x20] sm:$0xff]  }
  0x8e   : > { %2084 = vmatprep.subr.msk.bf16.mxu0 %vm3041_vm14, %v550_v37  ;;  %v563_v41 = vsel %vm3041_vm14, %v549_v40, 0  ;;  %v657_v46 = vsel %vm3041_vm14, %v643_v38, 0  ;;  %vm2580_vm8 = vcmp.ne.s16.totalorder %v393_v49, 0  ;;  %v353_v58 = vsel %vm352_vm0, 65537, %v2364_v0  ;;  %v2353_v37 = vld [vmem:[%s3032_s3 + $0x30] sm:$0xff]   ;;  %v2354_v49 = vld [vmem:[%s3032_s3 + $0x38] sm:$0xff]  }
  0x8f   : > { %569 = vmatpush1.bf16.msra.mxu0 %v563_v41  ;;  %v2547_v43 = vpop.permute.xlu1 %775  ;;  %v774_v44 = vpop.permute.xlu0 %773  ;;  %vm2591_vm9 = vcmp.ne.s16.totalorder %v798_v53, 0  ;;  %vm3079_vm0 = vcmask 1041408   ;;  %v357_v7 = vrot.slane %v353_v58, %v2502_v17  ;;  %v361_v8 = vrot.slane %v353_v58, %v2504_v18 }
  0x90   : > { %2089 = vmatprep.subr.msk.bf16.mxu0 %vm3041_vm14, %v644_v39  ;;  %v3076_v61 = vsel %vm2591_vm9, 4294967295, %v3075_v61  ;;  %v3089_v31 = vmov 0  ;;  %v2344_v39 = vld [vmem:[%s3030_s1] sm:$0xff]  }
  0x91   : > { %vm2634_vm11 = vcmp.ne.s16.totalorder %v357_v7, 0  ;;  %v2345_v7 = vld [vmem:[%s3030_s1 + $0x38] sm:$0xff]  }
  0x92   : > { %2085 = vmatmul.mubr.msk.bf16.vlgmr.msra.gmra.mrb[0].mxu0 %vm3040_vm6, %v2338_v42  ;;  %vm3044_vm6 = vcmask 1039360  }
  0x93   : > { %663 = vmatpush1.bf16.msra.mxu0 %v657_v46  ;;  %694 = vmatprep.mubr.bf16.mxu0 %v2364_v0  ;;  %v2568_v51 = vpop.permute.xlu1 %869  ;;  %v2570_v52 = vpop.permute.xlu0 %867 }
  0x94   : > { %2094 = vmatprep.subr.msk.bf16.mxu0 %vm3041_vm14, %v2432_v3  ;;  %vm2599_vm14 = vmand %vm3043_vm7, %vm2492_vm5  ;;  %v783_v3 = vsel %vm3044_vm6, %v2547_v43, %v774_v44  ;;  %vm3082_vm7 = vcmask 31744  }
  0x95   : > { %vm3081_vm5 = vmmov %vm3079_vm0  ;;  %v802_v16 = vsel %vm2591_vm9, %v783_v3, 0  ;;  %vm3099_vm9 = vcmask 31744  }
  0x96   : > { %v721_v15 = vsel %vm3081_vm5, %v2438_v4, 0  ;;  %vm3083_vm6 = vmmov %vm3082_vm7  ;;  %vm2638_vm5 = vcmp.ne.s16.totalorder %v361_v8, 0  ;;  %v2346_v8 = vld [vmem:[%s3030_s1 + $0x40] sm:$0xff]  }
  0x97   : > { %v371_v56 = vpop.permute.xlu1 %370  ;;  %v369_v57 = vpop.permute.xlu0 %368  ;;  %vm3100_vm12 = vmmov %vm3099_vm9 }
  0x98   : > { %v378_v59 = vsel %vm3042_vm3, %v369_v57, %v371_v56  ;;  %v373_v60 = vsel %vm3042_vm3, %v371_v56, %v369_v57  ;;  %vm3080_vm3 = vmmov %vm3079_vm0 }
  0x99   : > { %v397_v63 = vsel %vm2580_vm8, %v373_v60, 0  ;;  %v396_v1 = vsel %vm2584_vm15, %v378_v59, 0  ;;  %v2343_v60 = vld [vmem:[%s3030_s1 + $0x30] sm:$0xff]  }
  0x9a   : > { %2076 = vmatprep.subr.msk.bf16.mxu1 %vm3079_vm0, %v397_v63  ;;  %v412_v5 = vsel %vm3080_vm3, %v396_v1, 0  ;;  %vm887_vm3 = vmpackc.low %vm2599_vm14, %vm2488_vm4  ;;  %vm3046_vm0 = vcmask 138240   ;;  %vm3088_vm4 = vcmask 1041408   ;;  %vm2652_vm14 = vcmp.ne.s16.totalorder %v794_v19, 0 }
  0x9b   : > { %418 = vmatpush1.bf16.msra.mxu1 %v412_v5  ;;  %v2619_v10 = vpop.permute.xlu1 %967  ;;  %v2621_v11 = vpop.permute.xlu0 %965  ;;  %v888_v14 = vsel %vm887_vm3, 65537, %v2364_v0  ;;  %v3090_v31 = vsel %vm2652_vm14, 4294967295, %v3089_v31  ;;  %vm3093_vm3 = vmmov %vm3088_vm4 }
  0x9c   : > { %v896_v33 = vrot.slane %v888_v14, %v2504_v18  ;;  %v892_v42 = vrot.slane %v888_v14, %v2502_v17 }
  0x9e   : > { %2090 = vmatmul.mubr.msk.bf16.vlgmr.msra.gmra.mrb[0].mxu0 %vm3082_vm7, %v2339_v2  ;;  %2077 = vmatmul.mubr.msk.bf16.vlgmr.msra.gmra.mrb[0].mxu1 %vm3083_vm6, %v2342_v6  ;;  %vm3091_vm6 = vcmask 1039360   ;;  %vm3092_vm7 = vmmov %vm3088_vm4 }
  0x9f   : > { %727 = vmatpush1.bf16.msra.mxu0 %v721_v15  ;;  %758 = vmatprep.mubr.bf16.mxu0 %v2364_v0  ;;  %v333_v21 = vpop.permute.xlu1 %332  ;;  %v330_v22 = vpop.permute.xlu0 %329  ;;  %v778_v32 = vsel %vm3091_vm6, %v774_v44, %v2547_v43  ;;  %vm3096_vm6 = vmmov %vm3093_vm3 }
  0xa0   : > { %2099 = vmatprep.subr.msk.bf16.mxu0 %vm3088_vm4, %v802_v16  ;;  %v335_v23 = vsel %vm3046_vm0, %v333_v21, %v330_v22  ;;  %v340_v24 = vsel %vm3046_vm0, %v330_v22, %v333_v21  ;;  %506 = vmatprep.mubr.bf16.mxu1 %v2364_v0  ;;  %vm3050_vm4 = vcmask 924672   ;;  %v801_v35 = vsel %vm2652_vm14, %v778_v32, 0 }
  0xa1   : > { %v364_v25 = vsel %vm2634_vm11, %v340_v24, 0  ;;  %v365_v26 = vsel %vm2638_vm5, %v335_v23, 0  ;;  %vm2666_vm0 = vcmp.ne.s16.totalorder %v896_v33, 0  ;;  %v877_v38 = vsel %vm3050_vm4, %v2568_v51, %v2570_v52  ;;  %vm3101_vm4 = vmmov %vm3096_vm6 }
  0xa2   : > { %2079 = vmatprep.subr.msk.bf16.mxu1 %vm3092_vm7, %v365_v26  ;;  %v469_v34 = vsel %vm3093_vm3, %v364_v25, 0  ;;  %v815_v40 = vsel %vm3096_vm6, %v801_v35, 0  ;;  %vm3097_vm7 = vmmov 1   ;;  %vm3098_vm3 = vcmp.lt.s32.totalorder %v2474_v9, 240 }
  0xa3   : > { %475 = vmatpush1.bf16.msra.mxu1 %v469_v34  ;;  %vm981_vm14 = vmpackc.low %vm3098_vm3, %vm3097_vm7  ;;  %v900_v41 = vsel %vm2666_vm0, %v877_v38, 0  ;;  %vm2689_vm6 = vcmp.ne.s16.totalorder %v892_v42, 0  ;;  %v1062_v57 = vpop.permute.xlu1 %1061  ;;  %v1060_v58 = vpop.permute.xlu0 %1059 }
  0xa4   : > { %v982_v43 = vsel %vm981_vm14, 65537, %v2364_v0  ;;  %vm3105_vm14 = vmmov %vm3098_vm3  ;;  %vm3108_vm3 = vcmask 1041408  }
  0xa5   : > { %v990_v46 = vrot.slane %v982_v43, %v2504_v18  ;;  %v986_v13 = vrot.slane %v982_v43, %v2502_v17 }
  0xa7   : > { %vm2706_vm7 = vcmp.ne.s16.totalorder %v990_v46, 0  ;;  %v1789_v46 = vld [vmem:[%s3033_s4 + $0x8] sm:$0xff] }
  0xaa   : > { %2095 = vmatmul.mubr.msk.bf16.vlgmr.msra.gmra.mrb[0].mxu0 %vm3099_vm9, %v2340_v36  ;;  %2080 = vmatmul.mubr.msk.bf16.vlgmr.msra.gmra.mrb[0].mxu1 %vm3100_vm12, %v2344_v39  ;;  %vm3104_vm9 = vcmask 924672   ;;  %vm3051_vm12 = vcmask 916480  }
  0xab   : > { %821 = vmatpush1.bf16.msra.mxu0 %v815_v40  ;;  %852 = vmatprep.mubr.bf16.mxu0 %v2364_v0  ;;  %v872_v45 = vsel %vm3104_vm9, %v2570_v52, %v2568_v51  ;;  %v975_v50 = vsel %vm3051_vm12, %v2619_v10, %v2621_v11  ;;  %vm2723_vm12 = vcmp.ne.s16.totalorder %v986_v13, 0 }
  0xac   : > { %2104 = vmatprep.subr.msk.bf16.mxu0 %vm3101_vm4, %v900_v41  ;;  %1248 = vmatprep.mubr.bf16.mxu1 %v2364_v0  ;;  %v899_v47 = vsel %vm2689_vm6, %v872_v45, 0  ;;  %vm1072_vm4 = vmand %vm3105_vm14, %vm2481_vm2  ;;  %v994_v9 = vsel %vm2706_vm7, %v975_v50, 0  ;;  %vm3109_vm2 = vcmask 31744  }
  0xad   : > { %v913_v51 = vsel %vm3108_vm3, %v899_v47, 0  ;;  %vm1077_vm9 = vmpackc.low %vm1072_vm4, %vm2477_vm1  ;;  %vm3113_vm1 = vcmask 916480   ;;  %vm3052_vm4 = vcmask 908288   ;;  %v1788_v47 = vld [vmem:[%s3033_s4] sm:$0xff] }
  0xae   : > { %v1078_v52 = vsel %vm1077_vm9, 65537, %v2364_v0  ;;  %vm3110_vm14 = vmmov %vm3108_vm3  ;;  %v970_v12 = vsel %vm3113_vm1, %v2621_v11, %v2619_v10  ;;  %v1069_v63 = vsel %vm3052_vm4, %v1062_v57, %v1060_v58  ;;  %v1064_v5 = vsel %vm3052_vm4, %v1060_v58, %v1062_v57 }
  0xaf   : > { %v1086_v56 = vrot.slane %v1078_v52, %v2504_v18  ;;  %v993_v59 = vsel %vm2723_vm12, %v970_v12, 0  ;;  %vm3116_vm9 = vmmov %vm3110_vm14  ;;  %v1082_v2 = vrot.slane %v1078_v52, %v2502_v17  ;;  %v2347_v52 = vld [vmem:[%s3032_s3 + $0x8] sm:$0xff]  }
  0xb0   : > { %v1007_v1 = vsel %vm3116_vm9, %v993_v59, 0 }
  0xb1   : > { %vm2736_vm3 = vcmp.ne.s16.totalorder %v1086_v56, 0  ;;  %vm2748_vm1 = vcmp.ne.s16.totalorder %v1082_v2, 0 }
  0xb2   : > { %v1090_v18 = vsel %vm2736_vm3, %v1069_v63, 0  ;;  %v1089_v6 = vsel %vm2748_vm1, %v1064_v5, 0 }
  0xb3   : > { %v1103_v17 = vsel %vm3116_vm9, %v1089_v6, 0 }
  0xb4   : > { %v1160_v14 = vpop.permute.xlu0 %1159  ;;  %v1165_v25 = vpop.permute.xlu1 %1164 }
  0xb6   : > { %2100 = vmatmul.mubr.msk.bf16.vlgmr.msra.gmra.mrb[0].mxu0 %vm3109_vm2, %v2341_v48 }
  0xb7   : > { %919 = vmatpush1.bf16.msra.mxu0 %v913_v51  ;;  %950 = vmatprep.mubr.bf16.mxu0 %v2364_v0 }
  0xb8   : > { %2109 = vmatprep.subr.msk.bf16.mxu0 %vm3110_vm14, %v994_v9  ;;  %vm3117_vm14 = vmmov %vm3116_vm9  ;;  %vm3121_vm9 = vcmask 130048  }
  0xc2   : > { %2105 = vmatmul.mubr.msk.bf16.vlgmr.msra.gmra.mrb[0].mxu0 %vm3109_vm2, %v2343_v60 }
  0xc3   : > { %1013 = vmatpush1.bf16.msra.mxu0 %v1007_v1  ;;  %1044 = vmatprep.mubr.bf16.mxu0 %v2364_v0 }
  0xc4   : > { %2114 = vmatprep.subr.msk.bf16.mxu0 %vm3117_vm14, %v1090_v18  ;;  %vm3120_vm14 = vmmov %vm3109_vm2 }
  0xce   : > { %2110 = vmatmul.mubr.msk.bf16.vlgmr.msra.gmra.mrb[0].mxu0 %vm3109_vm2, %v2345_v7  ;;  %vm3122_vm2 = vmmov %vm3121_vm9 }
  0xcf   : > { %1109 = vmatpush1.bf16.msra.mxu0 %v1103_v17  ;;  %1140 = vmatprep.mubr.bf16.mxu0 %v2364_v0 }
  0xda   : > { %2115 = vmatmul.mubr.msk.bf16.vlgmr.msra.gmra.mrb[0].mxu0 %vm3120_vm14, %v2346_v8  ;;  %vm3123_vm14 = vcmask 138240  }
  0xdb   : > { %vm3124_vm4 = vmmov %vm3123_vm14 }
 0x17d   : > { %v508_v10 = vpop.f32.mrb[0].mxu1 }
 0x17e   : > { %v510_v11 = vpop.f32.mrb[1].mxu1 }
 0x17f   : > { %v512_v15 = vpop.f32.mrb[2].mxu1 }
 0x180   : > { %v514_v16 = vpop.f32.mrb[3].mxu1 }
 0x1ad   : > { %v1142_v19 = vpop.f32.mrb[0].mxu0 }
 0x1ae   : > { %v2233_v21 = vadd.f32 %v1142_v19, %v508_v10  ;;  %v1144_v22 = vpop.f32.mrb[1].mxu0 }
 0x1af   : > { %v2234_v23 = vadd.f32 %v1144_v22, %v510_v11  ;;  %v1146_v24 = vpop.f32.mrb[2].mxu0 }
 0x1b0   : > { %v2235_v26 = vadd.f32 %v1146_v24, %v512_v15  ;;  %v1167_v32 = vadd.f32 %v2233_v21, %v1160_v14  ;;  %v1148_v33 = vpop.f32.mrb[3].mxu0 }
 0x1b1   : > { %v1168_v34 = vadd.f32 %v2234_v23, %v1160_v14  ;;  %v2236_v35 = vadd.f32 %v1148_v33, %v514_v16  ;;  %v2355_v33 = vld [vmem:[%s3032_s3 + $0x40] sm:$0xff]  }
 0x1b2   : > { %v1169_v36 = vadd.f32 %v2235_v26, %v1165_v25  ;;  %v1171_v39 = vmax.f32 %v1167_v32, 0.0 }
 0x1b3   : > { %v1170_v38 = vadd.f32 %v2236_v35, %v1165_v25  ;;  %v1172_v41 = vmax.f32 %v1168_v34, 0.0 }
 0x1b4   : > { %v1173_v40 = vmax.f32 %v1169_v36, 0.0 }
 0x1b5   : > { %v1174_v42 = vmax.f32 %v1170_v38, 0.0 }
 0x1b6   : > { %v2765_v43 = vpack.c.bf16 %v1173_v40, %v1171_v39 }
 0x1b7   : > { %v1176_v45 = vpack.c.bf16 %v1174_v42, %v1172_v41 }
 0x1b8   : > { %1195 = vrot.lane.b32.xlu0 %v2765_v43, %s2369_s11 }
 0x1b9   : > { %1193 = vrot.lane.b32.xlu1 %v1176_v45, %s2369_s11 }
 0x1bc   : > { %1181 = vrot.lane.b32.xlu0 %v2765_v43, %s2371_s13 }
 0x1bd   : > { %1178 = vrot.lane.b32.xlu1 %v1176_v45, %s2371_s13  ;;  %s2161_s13 = sshll.u32 %s3159_s25, 5 }
 0x1be   : > { %s286_s26 = scalar_lea.vmem %s3035_s6, %s2161_s13 }
 0x1c0   : > { %1312 = vrot.lane.b32.xlu0 %v2765_v43, %s2365_s30 }
 0x1c1   : > { %1310 = vrot.lane.b32.xlu1 %v1176_v45, %s2365_s30 }
 0x1c4   : > { %1382 = vrot.lane.b32.xlu0 %v2765_v43, %s2366_s8 }
 0x1c5   : > { %1380 = vrot.lane.b32.xlu1 %v1176_v45, %s2366_s8 }
 0x1c8   : > { %1510 = vrot.lane.b32.xlu0 %v1176_v45, %s2367_s9 }
 0x1c9   : > { %1508 = vrot.lane.b32.xlu1 %v2765_v43, %s2367_s9 }
 0x1cc   : > { %1580 = vrot.lane.b32.xlu0 %v1176_v45, %s2368_s10 }
 0x1cd   : > { %1578 = vrot.lane.b32.xlu1 %v2765_v43, %s2368_s10 }
 0x1d0   : > { %1650 = vrot.lane.b32.xlu0 %v1176_v45, %s2370_s12 }
 0x1d1   : > { %1648 = vrot.lane.b32.xlu1 %v2765_v43, %s2370_s12 }
 0x1d4   : > { %1720 = vrot.lane.b32.xlu0 %v1176_v45, %s2372_s14 }
 0x1d5   : > { %1718 = vrot.lane.b32.xlu1 %v2765_v43, %s2372_s14 }
 0x1d8   : > { %1797 = vperm.xlu0 %2315, %v1789_v46   ;;  %v1881_v46 = vld [vmem:[%s3034_s5 + $0x88] sm:$0xff] }
 0x1d9   : > { %1792 = vperm.xlu1 %2316, %v1788_v47   ;;  %v1864_v47 = vld [vmem:[%s3034_s5] sm:$0xff] }
 0x22a   : > { %v1196_v48 = vpop.permute.xlu0 %1195 }
 0x22b   : > { %v1194_v50 = vpop.permute.xlu1 %1193 }
 0x22c   : > { %v1197_v51 = vsel %vm3121_vm9, %v1196_v48, %v1194_v50  ;;  %v1201_v9 = vsel %vm3122_vm2, %v1194_v50, %v1196_v48  ;;  %vm3125_vm9 = vmmov %vm3122_vm2 }
 0x22d   : > { %v1203_v13 = vsel %vm2584_vm15, %v1201_v9, 0  ;;  %2119 = vmatprep.subr.msk.bf16.mxu1 %vm2580_vm8, %v1197_v51  ;;  %vm3126_vm8 = vcmask 121856   ;;  %vm3128_vm15 = vmmov %vm3122_vm2  ;;  %vm3132_vm2 = vnez %v3064_v28  ;;  %v2351_v28 = vld [vmem:[%s3032_s3 + $0x20] sm:$0xff]   ;;  %v1865_v51 = vld [vmem:[%s3034_s5 + $0x8] sm:$0xff] }
 0x22e   : > { %1217 = vmatpush1.bf16.msra.mxu1 %v1203_v13  ;;  %v1182_v12 = vpop.permute.xlu0 %1181  ;;  %v1882_v9 = vld [vmem:[%s3034_s5 + $0x90] sm:$0xff]  ;;  %v1883_v13 = vld [vmem:[%s3034_s5 + $0x98] sm:$0xff] }
 0x22f   : > { %v1179_v56 = vpop.permute.xlu1 %1178 }
 0x230   : > { %v1183_v57 = vsel %vm3123_vm14, %v1182_v12, %v1179_v56  ;;  %v1187_v58 = vsel %vm3124_vm4, %v1179_v56, %v1182_v12  ;;  %vm3134_vm14 = vmmov %vm3125_vm9  ;;  %v2203_v56 = vpack.c.bf16 %v1865_v51, %v1864_v47 }
 0x231   : > { %v1189_v59 = vsel %vm2634_vm11, %v1187_v58, 0  ;;  %2120 = vmatmul.mubr.msk.bf16.vlgmr.msra.gmra.mrb[4].mxu1 %vm3125_vm9, %v2347_v52  ;;  %2122 = vmatprep.subr.msk.bf16.mxu1 %vm2638_vm5, %v1183_v57  ;;  %vm3127_vm11 = vmmov %vm3126_vm8  ;;  %vm3129_vm5 = vcmask 7168   ;;  %v2205_v57 = vpack.c.bf16 %v1883_v13, %v1882_v9  ;;  %v1866_v58 = vld [vmem:[%s3034_s5 + $0x10] sm:$0xff] }
 0x232   : > { %1268 = vmatpush1.bf16.msra.mxu1 %v1189_v59  ;;  %v1313_v54 = vpop.permute.xlu0 %1312  ;;  %1299 = vmatprep.mubr.bf16.mxu1 %v2364_v0  ;;  %vm3131_vm4 = vmmov %vm3129_vm5  ;;  %v1867_v59 = vld [vmem:[%s3034_s5 + $0x18] sm:$0xff] }
 0x233   : > { %v1311_v55 = vpop.permute.xlu1 %1310 }
 0x234   : > { %v1314_v60 = vsel %vm3126_vm8, %v1313_v54, %v1311_v55  ;;  %v1318_v63 = vsel %vm3127_vm11, %v1311_v55, %v1313_v54  ;;  %vm3136_vm8 = vnez %v3076_v61  ;;  %v2352_v61 = vld [vmem:[%s3032_s3 + $0x28] sm:$0xff]   ;;  %v1884_v54 = vld [vmem:[%s3034_s5 + $0xa0] sm:$0xff] }
 0x235   : > { %2127 = vmatprep.subr.msk.bf16.mxu1 %vm2512_vm10, %v1314_v60  ;;  %v1320_v4 = vsel %vm2524_vm13, %v1318_v63, 0  ;;  %vm3130_vm10 = vnez %v3066_v29  ;;  %vm3133_vm13 = vmmov %vm3125_vm9  ;;  %v2350_v29 = vld [vmem:[%s3032_s3 + $0x18] sm:$0xff]   ;;  %vm3135_vm9 = vcmask 1039360   ;;  %v1885_v55 = vld [vmem:[%s3034_s5 + $0xa8] sm:$0xff] }
 0x236   : > { %v1383_v1 = vpop.permute.xlu0 %1382  ;;  %vm3137_vm11 = vmmov %vm3135_vm9  ;;  %v2209_v63 = vpack.c.bf16 %v1885_v55, %v1884_v54 }
 0x237   : > { %v1381_v18 = vpop.permute.xlu1 %1380 }
 0x238   : > { %v1384_v2 = vsel %vm3129_vm5, %v1383_v1, %v1381_v18  ;;  %v1388_v5 = vsel %vm3131_vm4, %v1381_v18, %v1383_v1  ;;  %vm3139_vm5 = vmmov %vm3133_vm13  ;;  %v1868_v1 = vld [vmem:[%s3034_s5 + $0x20] sm:$0xff]  ;;  %v1869_v18 = vld [vmem:[%s3034_s5 + $0x28] sm:$0xff] }
 0x239   : > { %v1390_v30 = vsel %vm3132_vm2, %v1388_v5, 0  ;;  %vm3142_vm2 = vmmov %vm3139_vm5 }
 0x23a   : > { %v1511_v6 = vpop.permute.xlu0 %1510 }
 0x23b   : > { %v1509_v7 = vpop.permute.xlu1 %1508 }
 0x23c   : > { %v1516_v17 = vsel %vm3135_vm9, %v1511_v6, %v1509_v7  ;;  %v1512_v8 = vsel %vm3137_vm11, %v1509_v7, %v1511_v6  ;;  %vm3149_vm9 = vmmov %vm3142_vm2  ;;  %v1888_v6 = vld [vmem:[%s3034_s5 + $0xc0] sm:$0xff]  ;;  %v1889_v7 = vld [vmem:[%s3034_s5 + $0xc8] sm:$0xff] }
 0x23d   : > { %2123 = vmatmul.mubr.msk.bf16.vlgmr.msra.gmra.mrb[4].mxu1 %vm3128_vm15, %v2348_v20  ;;  %vm3138_vm15 = vnez %v3090_v31  ;;  %v2207_v20 = vpack.c.bf16 %v1867_v59, %v1866_v58 }
 0x23e   : > { %1334 = vmatpush1.bf16.msra.mxu1 %v1320_v4  ;;  %1365 = vmatprep.mubr.bf16.mxu1 %v2364_v0  ;;  %v1581_v10 = vpop.permute.xlu0 %1580  ;;  %v1518_v15 = vsel %vm3138_vm15, %v1512_v8, 0  ;;  %v1886_v4 = vld [vmem:[%s3034_s5 + $0xb0] sm:$0xff]  ;;  %v1872_v8 = vld [vmem:[%s3034_s5 + $0x40] sm:$0xff] }
 0x23f   : > { %2132 = vmatprep.subr.msk.bf16.mxu1 %vm3130_vm10, %v1384_v2  ;;  %v1579_v11 = vpop.permute.xlu1 %1578  ;;  %vm3140_vm10 = vcmask 924672   ;;  %v1887_v2 = vld [vmem:[%s3034_s5 + $0xb8] sm:$0xff] }
 0x240   : > { %v1586_v16 = vsel %vm3140_vm10, %v1581_v10, %v1579_v11  ;;  %vm3141_vm4 = vmmov %vm3140_vm10  ;;  %v2213_v5 = vpack.c.bf16 %v1887_v2, %v1886_v4 }
 0x241   : > { %v1582_v19 = vsel %vm3141_vm4, %v1579_v11, %v1581_v10  ;;  %v1873_v10 = vld [vmem:[%s3034_s5 + $0x48] sm:$0xff]  ;;  %v1890_v11 = vld [vmem:[%s3034_s5 + $0xd0] sm:$0xff] }
 0x242   : > { %v1651_v14 = vpop.permute.xlu0 %1650  ;;  %v1588_v31 = vsel %vm2689_vm6, %v1582_v19, 0  ;;  %vm3145_vm6 = vmmov %vm3142_vm2  ;;  %v1874_v19 = vld [vmem:[%s3034_s5 + $0x50] sm:$0xff] }
 0x243   : > { %v1649_v21 = vpop.permute.xlu1 %1648 }
 0x246   : > { %v1721_v24 = vpop.permute.xlu0 %1720 }
 0x247   : > { %v1719_v44 = vpop.permute.xlu1 %1718 }
 0x249   : > { %2128 = vmatmul.mubr.msk.bf16.vlgmr.msra.gmra.mrb[4].mxu1 %vm3133_vm13, %v2349_v27  ;;  %vm3143_vm13 = vcmask 916480   ;;  %v2211_v27 = vpack.c.bf16 %v1869_v18, %v1868_v1 }
 0x24a   : > { %1404 = vmatpush1.bf16.msra.mxu1 %v1390_v30  ;;  %1435 = vmatprep.mubr.bf16.mxu1 %v2364_v0  ;;  %v1656_v22 = vsel %vm3143_vm13, %v1651_v14, %v1649_v21  ;;  %v1870_v30 = vld [vmem:[%s3034_s5 + $0x30] sm:$0xff] }
 0x24b   : > { %1461 = vmatprep.subr.bf16.mxu1 %v1176_v45  ;;  %v1880_v45 = vld [vmem:[%s3034_s5 + $0x80] sm:$0xff] }
 0x24c   : > { %v2201_v50 = vpack.c.bf16 %v1881_v46, %v1880_v45 }
 0x24e   : > { %2202 = vmatprep.subr.bf16.mxu0 %v2201_v50 }
 0x24f   : > { %2204 = vmatpush3.bf16.msra.mxu0 %v2203_v56 }
 0x250   : > { %2206 = vmatprep.subr.bf16.mxu0 %v2205_v57 }
 0x253   : > { %2208 = vmatpush3.bf16.msra.mxu0 %v2207_v20 }
 0x254   : > { %2210 = vmatprep.subr.bf16.mxu0 %v2209_v63 }
 0x255   : > { %2133 = vmatmul.mubr.msk.bf16.vlgmr.msra.gmra.mrb[4].mxu1 %vm3134_vm14, %v2350_v29  ;;  %vm3146_vm14 = vcmask 908288   ;;  %v1871_v29 = vld [vmem:[%s3034_s5 + $0x38] sm:$0xff] }
 0x256   : > { %1462 = vmatpush1.bf16.msra.mxu1 %v2765_v43  ;;  %1493 = vmatprep.mubr.bf16.mxu1 %v2364_v0  ;;  %v1726_v26 = vsel %vm3146_vm14, %v1721_v24, %v1719_v44 }
 0x257   : > { %2141 = vmatprep.subr.msk.bf16.mxu1 %vm3136_vm8, %v1516_v17  ;;  %v1798_v38 = vpop.permute.xlu0 %1797  ;;  %2212 = vmatpush3.bf16.msra.mxu0 %v2211_v27  ;;  %v2215_v17 = vpack.c.bf16 %v1871_v29, %v1870_v30 }
 0x258   : > { %v1793_v62 = vpop.permute.xlu1 %1792  ;;  %2214 = vmatprep.subr.bf16.mxu0 %v2213_v5 }
 0x25b   : > { %2216 = vmatpush3.bf16.msra.mxu0 %v2215_v17 }
 0x261   : > { %2137 = vmatmul.mubr.msk.bf16.vlgmr.msra.gmra.mrb[4].mxu1 %vm3139_vm5, %v2351_v28  ;;  %v2217_v28 = vpack.c.bf16 %v1889_v7, %v1888_v6 }
 0x262   : > { %1532 = vmatpush1.bf16.msra.mxu1 %v1518_v15  ;;  %1563 = vmatprep.mubr.bf16.mxu1 %v2364_v0  ;;  %v1891_v15 = vld [vmem:[%s3034_s5 + $0xd8] sm:$0xff] }
 0x263   : > { %2146 = vmatprep.subr.msk.bf16.mxu1 %vm2666_vm0, %v1586_v16  ;;  %vm3144_vm0 = vmmov %vm3143_vm13  ;;  %v2219_v16 = vpack.c.bf16 %v1873_v10, %v1872_v8  ;;  %2218 = vmatprep.subr.bf16.mxu0 %v2217_v28 }
 0x264   : > { %v1652_v23 = vsel %vm3144_vm0, %v1649_v21, %v1651_v14  ;;  %v1875_v14 = vld [vmem:[%s3034_s5 + $0x58] sm:$0xff]  ;;  %v1892_v21 = vld [vmem:[%s3034_s5 + $0xe0] sm:$0xff]  ;;  %vm3154_vm15 = vmmov %vm3144_vm0 }
 0x265   : > { %v1658_v25 = vsel %vm2723_vm12, %v1652_v23, 0  ;;  %vm3148_vm12 = vmmov %vm3142_vm2  ;;  %2220 = vmatpush3.bf16.msra.mxu0 %v2219_v16  ;;  %v1876_v23 = vld [vmem:[%s3034_s5 + $0x60] sm:$0xff] }
 0x266   : > { %vm3155_vm5 = vmmov %vm3144_vm0 }
 0x267   : > { %vm3156_vm10 = vmmov %vm3144_vm0 }
 0x268   : > { %vm3157_vm4 = vmmov %vm3144_vm0 }
 0x26d   : > { %2142 = vmatmul.mubr.msk.bf16.vlgmr.msra.gmra.mrb[4].mxu1 %vm3142_vm2, %v2352_v61  ;;  %v2221_v61 = vpack.c.bf16 %v1891_v15, %v1890_v11  ;;  %vm1971_vm2 = vcmask 523264  }
 0x26e   : > { %1602 = vmatpush1.bf16.msra.mxu1 %v1588_v31  ;;  %1633 = vmatprep.mubr.bf16.mxu1 %v2364_v0  ;;  %v1893_v31 = vld [vmem:[%s3034_s5 + $0xe8] sm:$0xff] }
 0x26f   : > { %2151 = vmatprep.subr.msk.bf16.mxu1 %vm2706_vm7, %v1656_v22  ;;  %vm3147_vm7 = vmmov %vm3146_vm14  ;;  %v2223_v22 = vpack.c.bf16 %v1875_v14, %v1874_v19  ;;  %2222 = vmatprep.subr.bf16.mxu0 %v2221_v61 }
 0x270   : > { %v1722_v32 = vsel %vm3147_vm7, %v1719_v44, %v1721_v24  ;;  %v1877_v24 = vld [vmem:[%s3034_s5 + $0x68] sm:$0xff] }
 0x271   : > { %v1728_v53 = vsel %vm2748_vm1, %v1722_v32, 0  ;;  %2224 = vmatpush3.bf16.msra.mxu0 %v2223_v22  ;;  %v2227_v44 = vpack.c.bf16 %v1877_v24, %v1876_v23  ;;  %v1878_v32 = vld [vmem:[%s3034_s5 + $0x70] sm:$0xff] }
 0x279   : > { %2147 = vmatmul.mubr.msk.bf16.vlgmr.msra.gmra.mrb[4].mxu1 %vm3145_vm6, %v2353_v37  ;;  %v2225_v37 = vpack.c.bf16 %v1893_v31, %v1892_v21 }
 0x27a   : > { %1672 = vmatpush1.bf16.msra.mxu1 %v1658_v25  ;;  %1703 = vmatprep.mubr.bf16.mxu1 %v2364_v0  ;;  %v1894_v25 = vld [vmem:[%s3034_s5 + $0xf0] sm:$0xff] }
 0x27b   : > { %2156 = vmatprep.subr.msk.bf16.mxu1 %vm2736_vm3, %v1726_v26  ;;  %2226 = vmatprep.subr.bf16.mxu0 %v2225_v37  ;;  %v1895_v26 = vld [vmem:[%s3034_s5 + $0xf8] sm:$0xff]  ;;  %vm3150_vm3 = vmmov %vm3137_vm11 }
 0x27c   : > { %2228 = vmatpush3.bf16.msra.mxu0 %v2227_v44  ;;  %vm3151_vm1 = vmmov %vm3150_vm3 }
 0x27d   : > { %vm3152_vm8 = vmmov %vm3151_vm1 }
 0x27e   : > { %vm3153_vm11 = vmmov %vm3151_vm1 }
 0x285   : > { %2152 = vmatmul.mubr.msk.bf16.vlgmr.msra.gmra.mrb[4].mxu1 %vm3148_vm12, %v2354_v49  ;;  %v2229_v49 = vpack.c.bf16 %v1895_v26, %v1894_v25 }
 0x286   : > { %1742 = vmatpush1.bf16.msra.mxu1 %v1728_v53  ;;  %1773 = vmatprep.mubr.bf16.mxu1 %v2364_v0  ;;  %v1879_v53 = vld [vmem:[%s3034_s5 + $0x78] sm:$0xff] }
 0x287   : > { %2230 = vmatprep.subr.bf16.mxu0 %v2229_v49 }
 0x291   : > { %2157 = vmatmul.mubr.msk.bf16.vlgmr.msra.gmra.mrb[4].mxu1 %vm3149_vm9, %v2355_v33  ;;  %v2231_v33 = vpack.c.bf16 %v1879_v53, %v1878_v32 }
 0x293   : > { %2232 = vmatpush3.bf16.msra.mxu0 %v2231_v33 }
 0x364   : > { %v1775_v34 = vpop.f32.mrb[4].mxu1 }
 0x365   : > { %v1800_v35 = vadd.f32 %v1793_v62, %v1775_v34  ;;  %v1777_v36 = vpop.f32.mrb[5].mxu1 }
 0x366   : > { %v1801_v3 = vadd.f32 %v1793_v62, %v1777_v36  ;;  %v1779_v39 = vpop.f32.mrb[6].mxu1 }
 0x367   : > { %v2894_v40 = vmax.f32 %v1800_v35, 0.0  ;;  %v1802_v0 = vadd.f32 %v1798_v38, %v1779_v39  ;;  %v1781_v41 = vpop.f32.mrb[7].mxu1 }
 0x368   : > { %v2896_v42 = vmax.f32 %v1801_v3, 0.0  ;;  %v1803_v43 = vadd.f32 %v1798_v38, %v1781_v41 }
 0x369   : > { %1808 = vst [vmem:[%s286_s26] sm:$0xff] %v2894_v40  ;;  %v2908_v48 = vmax.f32 %v1802_v0, 0.0 }
 0x36a   : > { %1809 = vst [vmem:[%s286_s26 + $0x8] sm:$0xff] %v2896_v42  ;;  %v2920_v52 = vmax.f32 %v1803_v43, 0.0  ;;  %v2317_v12 = vpack.i.bf16 %v2896_v42, %v2894_v40 }
 0x36b   : > { %1810 = vst [vmem:[%s286_s26 + $0x10] sm:$0xff] %v2908_v48 }
 0x36c   : > { %1811 = vst [vmem:[%s286_s26 + $0x18] sm:$0xff] %v2920_v52  ;;  %2318 = vrot.lane.b32.xlu1 %v2317_v12, %s2367_s9  ;;  %v2322_v60 = vpack.i.bf16 %v2920_v52, %v2908_v48 }
 0x36e   : > { %2323 = vrot.lane.b32.xlu0 %v2322_v60, %s2367_s9 }
 0x3de   : > { %v2319_v62 = vpop.permute.xlu1 %2318 }
 0x3df   : > { %v2321_v34 = vunpack.i.h.bf16 %v2319_v62  ;;  %v2320_v35 = vunpack.i.l.bf16 %v2319_v62 }
 0x3e0   : > { %v2324_v36 = vpop.permute.xlu0 %2323 }
 0x3e1   : > { %v1824_v38 = vsel %vm3150_vm3, %v2320_v35, %v2321_v34  ;;  %v1832_v3 = vsel %vm3151_vm1, %v2321_v34, %v2320_v35  ;;  %v2326_v39 = vunpack.i.h.bf16 %v2324_v36  ;;  %v2325_v0 = vunpack.i.l.bf16 %v2324_v36 }
 0x3e2   : > { %v1834_v41 = vmax.f32 %v2894_v40, %v1824_v38  ;;  %v1835_v43 = vmax.f32 %v2896_v42, %v1832_v3 }
 0x3e3   : > { %v1825_v45 = vsel %vm3152_vm8, %v2325_v0, %v2326_v39  ;;  %v1833_v46 = vsel %vm3153_vm11, %v2326_v39, %v2325_v0 }
 0x3e4   : > { %v2327_v47 = vpack.i.bf16 %v1835_v43, %v1834_v41  ;;  %v1836_v50 = vmax.f32 %v2908_v48, %v1825_v45  ;;  %v1837_v51 = vmax.f32 %v2920_v52, %v1833_v46 }
 0x3e6   : > { %2328 = vrot.lane.b32.xlu1 %v2327_v47, %s2370_s12  ;;  %v2332_v9 = vpack.i.bf16 %v1837_v51, %v1836_v50 }
 0x3e8   : > { %2333 = vrot.lane.b32.xlu0 %v2332_v9, %s2370_s12  ;;  %s2162_s12 = sshll.u32 %s3159_s25, 4 }
 0x3e9   : > { %s291_s19 = scalar_lea.vmem %s3036_s7, %s2162_s12 }
 0x458   : > { %v2329_v13 = vpop.permute.xlu1 %2328 }
 0x459   : > { %v2331_v12 = vunpack.i.h.bf16 %v2329_v13  ;;  %v2330_v56 = vunpack.i.l.bf16 %v2329_v13 }
 0x45a   : > { %v2334_v40 = vpop.permute.xlu0 %2333 }
 0x45b   : > { %v1850_v42 = vsel %vm3154_vm15, %v2330_v56, %v2331_v12  ;;  %v2336_v57 = vunpack.i.h.bf16 %v2334_v40  ;;  %v2335_v58 = vunpack.i.l.bf16 %v2334_v40  ;;  %v1858_v59 = vsel %vm3155_vm5, %v2331_v12, %v2330_v56 }
 0x45c   : > { %v1860_v54 = vmax.f32 %v1834_v41, %v1850_v42  ;;  %v1861_v48 = vmax.f32 %v1835_v43, %v1858_v59 }
 0x45d   : > { %v1859_v52 = vsel %vm3156_vm10, %v2336_v57, %v2335_v58  ;;  %v1851_v60 = vsel %vm3157_vm4, %v2335_v58, %v2336_v57 }
 0x45e   : > { %1960 = vmatprep.mubr.f32.mxu0 %v1861_v48  ;;  %v1863_v55 = vmax.f32 %v1837_v51, %v1859_v52  ;;  %v1862_v20 = vmax.f32 %v1836_v50, %v1851_v60 }
 0x45f   : > { %1961 = vmatmul.mubr.f32.vlgmr.msra.gmra.mrb[4].mxu0 %v1860_v54 }
 0x460   : > { %1965 = vmatprep.mubr.f32.mxu0 %v1863_v55 }
 0x463   : > { %1966 = vmatmul.mubr.f32.gmra.mrb[6].mxu0 %v1862_v20 }
 0x532   : > { %v2195_v63 = vpop.f32.mrb[4].mxu0 }
 0x533   : > { %v2196_v1 = vpop.f32.mrb[5].mxu0 }
 0x534   : > { %v2197_v18 = vadd.f32 %v2196_v1, %v2195_v63 }
 0x536   : > { %1972 = vst.msk [vmem:[%s291_s19] sm:$0xff] %vm1971_vm2, %v2197_v18  ;;  %v2198_v4 = vpop.f32.mrb[6].mxu0 }
 0x537   : > { %v2199_v2 = vpop.f32.mrb[7].mxu0 }
 0x538   : > { %v2200_v27 = vadd.f32 %v2199_v2, %v2198_v4 }
 0x53a   : > { %1973 = vst.msk [vmem:[%s291_s19 + $0x8] sm:$0xff] %vm1971_vm2, %v2200_v27 }
 0x53b PF: > { %s18_s24 = sadd.s32 1, %s2362_s24  }
 0x53c   : > { %p15_p4 = scmp.ge.s32.totalorder %s18_s24, 4  }
 0x53e   :  { %17 = sbr.rel (!%p15_p4) target bundleno = 1 (0x1), region = 102 }

</bundles_post_ra>
